<compile_context>
chip_gen: v6e
topology: v6e:2x2x1
jax: 0.10.0
libtpu: 0.0.40
codegen_flags: <defaults>
</compile_context>

<pallas_src>
import functools

import jax
import jax.numpy as jnp
from jax import lax
from jax.experimental import pallas as pl
from jax.experimental.pallas import tpu as pltpu


def _round_up(x, m):
    return (x + m - 1) // m * m


def _pad_gate_axis(w, H, Hp):
    """Pad the trailing 4*H gate axis to 4*Hp, keeping each gate block lane-aligned."""
    lead = w.shape[:-1]
    w4 = w.reshape(lead + (4, H))
    pad = [(0, 0)] * len(lead) + [(0, 0), (0, Hp - H)]
    return jnp.pad(w4, pad).reshape(lead + (4 * Hp,))


def _pick_steps_per_block(seq_len, batch_tile, hidden_pad):
    """Divisor of T when possible, >=2 chunks for DMA/compute overlap, VMEM-capped."""
    if seq_len <= 1:
        return max(seq_len, 1)
    # Keep the per-chunk f32 gates scratch under ~8 MiB.
    slab_row_bytes = batch_tile * 4 * hidden_pad * 4
    vmem_cap_steps = max(1, (8 << 20) // slab_row_bytes)
    cap = max(1, min(64, vmem_cap_steps, -(-seq_len // 2)))   # >= 2 chunks
    for s in range(cap, 0, -1):
        if seq_len % s == 0 and 2 * s >= cap:
            return s          # divides T: no tail masking anywhere
    return cap                # ragged tail: mask only in the last chunk


def _vmem_limit_bytes(steps, Bt, Ip, Hp, mm_itemsize):
    """Real footprint with headroom; None if the 32 MiB default is enough."""
    f32 = 4
    x_blk = steps * Bt * Ip * f32
    w_ih = Ip * 4 * Hp * mm_itemsize
    w_hh = Hp * 4 * Hp * mm_itemsize
    bias = 8 * 4 * Hp * f32
    state = Bt * Hp * f32
    gx = steps * Bt * 4 * Hp * f32
    # inputs & outputs double-buffered by the default pipeline, plus scratch
    need = 2 * (x_blk + w_ih + w_hh + bias + 2 * state) + 2 * (2 * state) + gx
    need = int(need * 1.25) + (2 << 20)
    if need <= (32 << 20):
        return None
    try:
        cap = pltpu.get_tpu_info().vmem_capacity_bytes
    except Exception:  # pragma: no cover - conservative fallback (v7x: 64 MiB/TC)
        cap = 64 << 20
    return min(need, cap - (2 << 20))


def lstm_chunk_kernel(x_ref, h0_ref, c0_ref, w_ih_ref, w_hh_ref, bias_ref,
                      h_out_ref, c_out_ref, gx_scr,
                      *, seq_len, steps_per_block, hidden_pad, unroll):
    """One batch tile x one time chunk: fused input projection + serial recurrence."""
    chunk = pl.program_id(1)
    Hp = hidden_pad
    S, Bt, Ip = x_ref.shape

    # --- chunk-level input projection: one MXU matmul, off the per-step chain ---
    x2d = x_ref[...].astype(w_ih_ref.dtype).reshape(S * Bt, Ip)
    gx_scr[...] = (jnp.dot(x2d, w_ih_ref[...], preferred_element_type=jnp.float32)
                   + bias_ref[...])                       # bias folded once per chunk

    # Seed the resident output blocks (they ARE the running h/c state).
    @pl.when(chunk == 0)
    def _():
        h_out_ref[...] = h0_ref[...]
        c_out_ref[...] = c0_ref[...]

    def run(mask_tail):
        def step(s, carry):
            h, c = carry
            row0 = pl.multiple_of(s * Bt, Bt)
            gx_s = gx_scr[pl.ds(row0, Bt), :]             # (Bt, 4*Hp), f32
            gates = gx_s + jnp.dot(h.astype(w_hh_ref.dtype), w_hh_ref[...],
                                   preferred_element_type=jnp.float32)
            # Gate order [i, f, g, o]; each slice is a full lane-aligned block.
            i_g = jax.nn.sigmoid(gates[:, 0 * Hp:1 * Hp])
            f_g = jax.nn.sigmoid(gates[:, 1 * Hp:2 * Hp])
            g_g = jnp.tanh(gates[:, 2 * Hp:3 * Hp])
            o_g = jax.nn.sigmoid(gates[:, 3 * Hp:4 * Hp])
            c_new = f_g * c + i_g * g_g
            h_new = o_g * jnp.tanh(c_new)
            if mask_tail:  # only emitted for the last chunk of a ragged T
                valid = (chunk * steps_per_block + s) < seq_len
                h_new = jnp.where(valid, h_new, h)
                c_new = jnp.where(valid, c_new, c)
            return h_new, c_new

        h, c = lax.fori_loop(0, steps_per_block, step,
                             (h_out_ref[...], c_out_ref[...]), unroll=unroll)
        h_out_ref[...] = h
        c_out_ref[...] = c

    if seq_len % steps_per_block == 0:
        run(mask_tail=False)                    # hot path: no per-step masking at all
    else:
        last = pl.num_programs(1) - 1

        @pl.when(chunk != last)
        def _():
            run(mask_tail=False)

        @pl.when(chunk == last)
        def _():
            run(mask_tail=True)


def encoder_forward(inputs, params, hidden=None, *,
                    steps_per_block=None, batch_block=None,
                    matmul_dtype=jnp.bfloat16):
    """Equivalent of Encoder.forward: returns (h_n, c_n), each (1, B, H)."""
    T, B, I = inputs.shape
    w_ih_t, w_hh_t, bias = params        # (I, 4H), (H, 4H), (1, 4H)
    H = w_hh_t.shape[0]

    Hp = _round_up(H, 128)               # lane-align each gate block
    Ip = _round_up(I, 128)               # lane-align the input contraction

    # One resident batch tile by default (fills MXU rows up to ~256 on v6e/v7x).
    # On v7x with B >= 16, pass batch_block ~= ceil(B/2) so the leading "parallel"
    # grid axis shards the batch across the two TensorCores.
    Bt = _round_up(B if batch_block is None else batch_block, 8)
    num_btiles = pl.cdiv(_round_up(B, 8), Bt)
    Bp = Bt * num_btiles

    if steps_per_block is None:
        steps_per_block = _pick_steps_per_block(T, Bt, Hp)
    steps_per_block = max(1, min(steps_per_block, T))
    num_chunks = pl.cdiv(T, steps_per_block)
    Tp = num_chunks * steps_per_block

    # Gate-block padded weights. Zero pads keep padded hidden lanes at exactly 0
    # through the recurrence (sigmoid(0)*0 + sigmoid(0)*tanh(0) == 0) so they never
    # contaminate real lanes via W_hh; bf16 preserves exact zeros.
    w_ih_p = jnp.pad(_pad_gate_axis(w_ih_t, H, Hp),
                     ((0, Ip - I), (0, 0))).astype(matmul_dtype)      # (Ip, 4*Hp)
    w_hh_p = jnp.pad(_pad_gate_axis(w_hh_t, H, Hp),
                     ((0, Hp - H), (0, 0))).astype(matmul_dtype)      # (Hp, 4*Hp)
    bias_p = _pad_gate_axis(bias, H, Hp).astype(jnp.float32)          # (1, 4*Hp)

    # Pad only the small raw input (no (Tp,Bp,4Hp) gates tensor in HBM anymore).
    x_pad = jnp.pad(inputs.astype(jnp.float32),
                    ((0, Tp - T), (0, Bp - B), (0, Ip - I)))

    if hidden is None:                   # self.hidden is None -> zeros (PyTorch default)
        h0 = jnp.zeros((Bp, Hp), jnp.float32)
        c0 = jnp.zeros((Bp, Hp), jnp.float32)
    else:
        h0 = jnp.pad(hidden[0][0].astype(jnp.float32), ((0, Bp - B), (0, Hp - H)))
        c0 = jnp.pad(hidden[1][0].astype(jnp.float32), ((0, Bp - B), (0, Hp - H)))

    kernel = functools.partial(
        lstm_chunk_kernel,
        seq_len=T, steps_per_block=steps_per_block, hidden_pad=Hp,
        unroll=True if steps_per_block <= 8 else 8)

    grid_spec = pltpu.PrefetchScalarGridSpec(
        num_scalar_prefetch=0,
        grid=(num_btiles, num_chunks),    # (parallel batch tiles, sequential time)
        in_specs=[
            pl.BlockSpec((steps_per_block, Bt, Ip), lambda b, c: (c, b, 0)),  # x chunk
            pl.BlockSpec((Bt, Hp), lambda b, c: (b, 0)),                      # h0
            pl.BlockSpec((Bt, Hp), lambda b, c: (b, 0)),                      # c0
            pl.BlockSpec((Ip, 4 * Hp), lambda b, c: (0, 0)),                  # W_ih^T (resident)
            pl.BlockSpec((Hp, 4 * Hp), lambda b, c: (0, 0)),                  # W_hh^T (resident)
            pl.BlockSpec((1, 4 * Hp), lambda b, c: (0, 0)),                   # fused bias
        ],
        out_specs=[
            pl.BlockSpec((Bt, Hp), lambda b, c: (b, 0)),                      # h_n (= running h)
            pl.BlockSpec((Bt, Hp), lambda b, c: (b, 0)),                      # c_n (= running c)
        ],
        scratch_shapes=[
            pltpu.VMEM((steps_per_block * Bt, 4 * Hp), jnp.float32),          # chunk gates_x
        ],
    )

    vmem_limit = _vmem_limit_bytes(steps_per_block, Bt, Ip, Hp,
                                   jnp.dtype(matmul_dtype).itemsize)

    h_pad, c_pad = pl.pallas_call(
        kernel,
        out_shape=(jax.ShapeDtypeStruct((Bp, Hp), jnp.float32),
                   jax.ShapeDtypeStruct((Bp, Hp), jnp.float32)),
        grid_spec=grid_spec,
        compiler_params=pltpu.CompilerParams(
            dimension_semantics=("parallel", "arbitrary"),
            vmem_limit_bytes=vmem_limit),
    )(x_pad, h0, c0, w_ih_p, w_hh_p, bias_p)

    # num_layers == 1 (module default). TODO(synk): stacked num_layers > 1 not implemented.
    h_n = h_pad[:B, :H][None, :, :]
    c_n = c_pad[:B, :H][None, :, :]
    return h_n, c_n


def lstm_ref(inputs, params, hidden=None):
    """Pure-JAX reference replicating torch.nn.LSTM (1 layer) final state."""
    T, B, I = inputs.shape
    w_ih_t, w_hh_t, bias = params
    H = w_hh_t.shape[0]
    if hidden is None:
        h = jnp.zeros((B, H), jnp.float32)
        c = jnp.zeros((B, H), jnp.float32)
    else:
        h, c = hidden[0][0], hidden[1][0]

    def step(carry, x_t):
        h, c = carry
        gates = x_t @ w_ih_t + h @ w_hh_t + bias[0]
        i = jax.nn.sigmoid(gates[:, :H])
        f = jax.nn.sigmoid(gates[:, H:2 * H])
        g = jnp.tanh(gates[:, 2 * H:3 * H])
        o = jax.nn.sigmoid(gates[:, 3 * H:])
        c = f * c + i * g
        h = o * jnp.tanh(c)
        return (h, c), None

    (h, c), _ = jax.lax.scan(step, (h, c), inputs)
    return h[None], c[None]


def init_lstm_params(key, input_size, hidden_dim):
    """Deterministic init mirroring nn.LSTM's U(-1/sqrt(H), 1/sqrt(H))."""
    k1, k2, k3, k4 = jax.random.split(key, 4)
    bound = 1.0 / jnp.sqrt(hidden_dim)
    w_ih = jax.random.uniform(k1, (4 * hidden_dim, input_size),
                              jnp.float32, -bound, bound)
    w_hh = jax.random.uniform(k2, (4 * hidden_dim, hidden_dim),
                              jnp.float32, -bound, bound)
    b_ih = jax.random.uniform(k3, (4 * hidden_dim,), jnp.float32, -bound, bound)
    b_hh = jax.random.uniform(k4, (4 * hidden_dim,), jnp.float32, -bound, bound)
    # Pre-transpose weights and fuse biases for the kernel.
    return (w_ih.T, w_hh.T, (b_ih + b_hh)[None, :])


if __name__ == "__main__":
    seq_len, batch, input_size, hidden_dim = 8, 2, 4, 32

    key = jax.random.PRNGKey(0)
    k_params, k_x = jax.random.split(key)
    params = init_lstm_params(k_params, input_size, hidden_dim)

    # Encoder.forward input: (seq_len, batch, input_size) — time-major.
    x = jax.random.normal(k_x, (seq_len, batch, input_size), jnp.float32)

    h_ref, c_ref = lstm_ref(x, params)

    # Strict-f32 path: matches the reference math up to fp rounding.
    h_n, c_n = encoder_forward(x, params, matmul_dtype=jnp.float32)
    jax.block_until_ready((h_n, c_n))
    assert h_n.shape == (1, batch, hidden_dim)
    assert c_n.shape == (1, batch, hidden_dim)
    assert jnp.allclose(h_n, h_ref, atol=1e-5, rtol=1e-5)
    assert jnp.allclose(c_n, c_ref, atol=1e-5, rtol=1e-5)

    # Production default: bf16 MXU matmuls with f32 state/gates — loose tolerance.
    h_bf, c_bf = encoder_forward(x, params)
    jax.block_until_ready((h_bf, c_bf))
    assert jnp.allclose(h_bf, h_ref, atol=5e-2, rtol=5e-2)
    assert jnp.allclose(c_bf, c_ref, atol=5e-2, rtol=5e-2)

    print("KERNEL_OK")
</pallas_src>

<mosaic_0001>
module attributes {stable_mosaic.version = 11 : i64} {
  func.func @lstm_chunk_kernel(%arg0: i32, %arg1: i32, %arg2: memref<4x8x128xf32, #tpu.memory_space<vmem>>, %arg3: memref<8x128xf32, #tpu.memory_space<vmem>>, %arg4: memref<8x128xf32, #tpu.memory_space<vmem>>, %arg5: memref<128x512xf32, #tpu.memory_space<vmem>>, %arg6: memref<128x512xf32, #tpu.memory_space<vmem>>, %arg7: memref<1x512xf32, #tpu.memory_space<vmem>>, %arg8: memref<8x128xf32, #tpu.memory_space<vmem>>, %arg9: memref<8x128xf32, #tpu.memory_space<vmem>>, %arg10: memref<32x512xf32, #tpu.memory_space<vmem>>) attributes {dimension_semantics = [#tpu.dimension_semantics<parallel>, #tpu.dimension_semantics<arbitrary>], iteration_bounds = array<i64: 1, 2>, scalar_prefetch = 0 : i64, scratch_operands = 1 : i64, tpu.core_type = #tpu.core_type<tc>, window_params = [{transform_indices = @transform_0, window_bounds = array<i64: 4, 8, 128>}, {transform_indices = @transform_1, window_bounds = array<i64: 8, 128>}, {transform_indices = @transform_2, window_bounds = array<i64: 8, 128>}, {pipeline_mode = #tpu.pipeline_mode<synchronous>, transform_indices = @transform_3, window_bounds = array<i64: 128, 512>}, {pipeline_mode = #tpu.pipeline_mode<synchronous>, transform_indices = @transform_4, window_bounds = array<i64: 128, 512>}, {pipeline_mode = #tpu.pipeline_mode<synchronous>, transform_indices = @transform_5, window_bounds = array<i64: 1, 512>}, {transform_indices = @transform_6, window_bounds = array<i64: 8, 128>}, {transform_indices = @transform_7, window_bounds = array<i64: 8, 128>}]} {
    %c0 = arith.constant 0 : index
    %c0_0 = arith.constant 0 : index
    %c0_1 = arith.constant 0 : index
    %0 = vector.load %arg2[%c0, %c0_0, %c0_1] : memref<4x8x128xf32, #tpu.memory_space<vmem>>, vector<4x8x128xf32>
    %1 = vector.shape_cast %0 : vector<4x8x128xf32> to vector<32x128xf32>
    %c0_2 = arith.constant 0 : index
    %c0_3 = arith.constant 0 : index
    %2 = vector.load %arg5[%c0_2, %c0_3] : memref<128x512xf32, #tpu.memory_space<vmem>>, vector<128x512xf32>
    %cst = arith.constant dense<0.000000e+00> : vector<32x512xf32>
    %3 = tpu.matmul %1, %2, %cst {dimension_numbers = #tpu.dot_dimension_numbers<[1], [0], [0], [1], [0, 0, 1, 1], [], []>} : vector<32x128xf32>, vector<128x512xf32>, vector<32x512xf32> -> vector<32x512xf32>
    %c0_4 = arith.constant 0 : index
    %c0_5 = arith.constant 0 : index
    %4 = vector.load %arg7[%c0_4, %c0_5] : memref<1x512xf32, #tpu.memory_space<vmem>>, vector<1x512xf32>
    %5 = vector.broadcast %4 : vector<1x512xf32> to vector<32x512xf32>
    %6 = arith.addf %3, %5 : vector<32x512xf32>
    %c0_6 = arith.constant 0 : index
    %c0_7 = arith.constant 0 : index
    %7 = vector.load %arg10[%c0_6, %c0_7] : memref<32x512xf32, #tpu.memory_space<vmem>>, vector<32x512xf32>
    tpu.vector_store %arg10[%c0_6, %c0_7], %6 {strides = array<i32>} : memref<32x512xf32, #tpu.memory_space<vmem>>, vector<32x512xf32>,
    %c0_i32 = arith.constant 0 : i32
    %8 = arith.cmpi eq, %arg1, %c0_i32 : i32
    %9 = arith.extui %8 : i1 to i32
    %c0_i32_8 = arith.constant 0 : i32
    %10 = arith.cmpi ne, %9, %c0_i32_8 : i32
    scf.if %10 {
      %c0_49 = arith.constant 0 : index
      %c0_50 = arith.constant 0 : index
      %143 = vector.load %arg3[%c0_49, %c0_50] : memref<8x128xf32, #tpu.memory_space<vmem>>, vector<8x128xf32>
      %c0_51 = arith.constant 0 : index
      %c0_52 = arith.constant 0 : index
      %144 = vector.load %arg8[%c0_51, %c0_52] : memref<8x128xf32, #tpu.memory_space<vmem>>, vector<8x128xf32>
      tpu.vector_store %arg8[%c0_51, %c0_52], %143 {strides = array<i32>} : memref<8x128xf32, #tpu.memory_space<vmem>>, vector<8x128xf32>,
      %c0_53 = arith.constant 0 : index
      %c0_54 = arith.constant 0 : index
      %145 = vector.load %arg4[%c0_53, %c0_54] : memref<8x128xf32, #tpu.memory_space<vmem>>, vector<8x128xf32>
      %c0_55 = arith.constant 0 : index
      %c0_56 = arith.constant 0 : index
      %146 = vector.load %arg9[%c0_55, %c0_56] : memref<8x128xf32, #tpu.memory_space<vmem>>, vector<8x128xf32>
      tpu.vector_store %arg9[%c0_55, %c0_56], %145 {strides = array<i32>} : memref<8x128xf32, #tpu.memory_space<vmem>>, vector<8x128xf32>,
    } else {
    }
    %c0_9 = arith.constant 0 : index
    %c0_10 = arith.constant 0 : index
    %11 = vector.load %arg8[%c0_9, %c0_10] : memref<8x128xf32, #tpu.memory_space<vmem>>, vector<8x128xf32>
    %c0_11 = arith.constant 0 : index
    %c0_12 = arith.constant 0 : index
    %12 = vector.load %arg9[%c0_11, %c0_12] : memref<8x128xf32, #tpu.memory_space<vmem>>, vector<8x128xf32>
    %c0_i32_13 = arith.constant 0 : i32
    %c8_i32 = arith.constant 8 : i32
    %13 = arith.muli %c0_i32_13, %c8_i32 : i32
    %14 = tpu.assume_multiple %13, 8 : i32
    %15 = arith.index_cast %14 : i32 to index
    %c0_14 = arith.constant 0 : index
    %16 = vector.load %arg10[%15, %c0_14] : memref<32x512xf32, #tpu.memory_space<vmem>>, vector<8x512xf32>
    %c0_15 = arith.constant 0 : index
    %c0_16 = arith.constant 0 : index
    %17 = vector.load %arg6[%c0_15, %c0_16] : memref<128x512xf32, #tpu.memory_space<vmem>>, vector<128x512xf32>
    %cst_17 = arith.constant dense<0.000000e+00> : vector<8x512xf32>
    %18 = tpu.matmul %11, %17, %cst_17 {dimension_numbers = #tpu.dot_dimension_numbers<[1], [0], [0], [1], [0, 0, 1, 1], [], []>} : vector<8x128xf32>, vector<128x512xf32>, vector<8x512xf32> -> vector<8x512xf32>
    %19 = arith.addf %16, %18 : vector<8x512xf32>
    %20 = vector.extract_strided_slice %19 {offsets = [0, 0], sizes = [8, 128], strides = [1, 1]} : vector<8x512xf32> to vector<8x128xf32>
    %21 = arith.negf %20 : vector<8x128xf32>
    %22 = math.exp %21 : vector<8x128xf32>
    %cst_18 = arith.constant 1.000000e+00 : f32
    %23 = vector.broadcast %cst_18 : f32 to vector<8x128xf32>
    %24 = arith.addf %23, %22 : vector<8x128xf32>
    %25 = arith.divf %23, %24 : vector<8x128xf32>
    %26 = vector.extract_strided_slice %19 {offsets = [0, 128], sizes = [8, 128], strides = [1, 1]} : vector<8x512xf32> to vector<8x128xf32>
    %27 = arith.negf %26 : vector<8x128xf32>
    %28 = math.exp %27 : vector<8x128xf32>
    %cst_19 = arith.constant 1.000000e+00 : f32
    %29 = vector.broadcast %cst_19 : f32 to vector<8x128xf32>
    %30 = arith.addf %29, %28 : vector<8x128xf32>
    %31 = arith.divf %29, %30 : vector<8x128xf32>
    %32 = vector.extract_strided_slice %19 {offsets = [0, 256], sizes = [8, 128], strides = [1, 1]} : vector<8x512xf32> to vector<8x128xf32>
    %33 = math.tanh %32 : vector<8x128xf32>
    %34 = vector.extract_strided_slice %19 {offsets = [0, 384], sizes = [8, 128], strides = [1, 1]} : vector<8x512xf32> to vector<8x128xf32>
    %35 = arith.negf %34 : vector<8x128xf32>
    %36 = math.exp %35 : vector<8x128xf32>
    %cst_20 = arith.constant 1.000000e+00 : f32
    %37 = vector.broadcast %cst_20 : f32 to vector<8x128xf32>
    %38 = arith.addf %37, %36 : vector<8x128xf32>
    %39 = arith.divf %37, %38 : vector<8x128xf32>
    %40 = arith.mulf %31, %12 : vector<8x128xf32>
    %41 = arith.mulf %25, %33 : vector<8x128xf32>
    %42 = arith.addf %40, %41 : vector<8x128xf32>
    %43 = math.tanh %42 : vector<8x128xf32>
    %44 = arith.mulf %39, %43 : vector<8x128xf32>
    %c1_i32 = arith.constant 1 : i32
    %c8_i32_21 = arith.constant 8 : i32
    %45 = arith.muli %c1_i32, %c8_i32_21 : i32
    %46 = tpu.assume_multiple %45, 8 : i32
    %47 = arith.index_cast %46 : i32 to index
    %c0_22 = arith.constant 0 : index
    %48 = vector.load %arg10[%47, %c0_22] : memref<32x512xf32, #tpu.memory_space<vmem>>, vector<8x512xf32>
    %c0_23 = arith.constant 0 : index
    %c0_24 = arith.constant 0 : index
    %49 = vector.load %arg6[%c0_23, %c0_24] : memref<128x512xf32, #tpu.memory_space<vmem>>, vector<128x512xf32>
    %cst_25 = arith.constant dense<0.000000e+00> : vector<8x512xf32>
    %50 = tpu.matmul %44, %49, %cst_25 {dimension_numbers = #tpu.dot_dimension_numbers<[1], [0], [0], [1], [0, 0, 1, 1], [], []>} : vector<8x128xf32>, vector<128x512xf32>, vector<8x512xf32> -> vector<8x512xf32>
    %51 = arith.addf %48, %50 : vector<8x512xf32>
    %52 = vector.extract_strided_slice %51 {offsets = [0, 0], sizes = [8, 128], strides = [1, 1]} : vector<8x512xf32> to vector<8x128xf32>
    %53 = arith.negf %52 : vector<8x128xf32>
    %54 = math.exp %53 : vector<8x128xf32>
    %cst_26 = arith.constant 1.000000e+00 : f32
    %55 = vector.broadcast %cst_26 : f32 to vector<8x128xf32>
    %56 = arith.addf %55, %54 : vector<8x128xf32>
    %57 = arith.divf %55, %56 : vector<8x128xf32>
    %58 = vector.extract_strided_slice %51 {offsets = [0, 128], sizes = [8, 128], strides = [1, 1]} : vector<8x512xf32> to vector<8x128xf32>
    %59 = arith.negf %58 : vector<8x128xf32>
    %60 = math.exp %59 : vector<8x128xf32>
    %cst_27 = arith.constant 1.000000e+00 : f32
    %61 = vector.broadcast %cst_27 : f32 to vector<8x128xf32>
    %62 = arith.addf %61, %60 : vector<8x128xf32>
    %63 = arith.divf %61, %62 : vector<8x128xf32>
    %64 = vector.extract_strided_slice %51 {offsets = [0, 256], sizes = [8, 128], strides = [1, 1]} : vector<8x512xf32> to vector<8x128xf32>
    %65 = math.tanh %64 : vector<8x128xf32>
    %66 = vector.extract_strided_slice %51 {offsets = [0, 384], sizes = [8, 128], strides = [1, 1]} : vector<8x512xf32> to vector<8x128xf32>
    %67 = arith.negf %66 : vector<8x128xf32>
    %68 = math.exp %67 : vector<8x128xf32>
    %cst_28 = arith.constant 1.000000e+00 : f32
    %69 = vector.broadcast %cst_28 : f32 to vector<8x128xf32>
    %70 = arith.addf %69, %68 : vector<8x128xf32>
    %71 = arith.divf %69, %70 : vector<8x128xf32>
    %72 = arith.mulf %63, %42 : vector<8x128xf32>
    %73 = arith.mulf %57, %65 : vector<8x128xf32>
    %74 = arith.addf %72, %73 : vector<8x128xf32>
    %75 = math.tanh %74 : vector<8x128xf32>
    %76 = arith.mulf %71, %75 : vector<8x128xf32>
    %c2_i32 = arith.constant 2 : i32
    %c8_i32_29 = arith.constant 8 : i32
    %77 = arith.muli %c2_i32, %c8_i32_29 : i32
    %78 = tpu.assume_multiple %77, 8 : i32
    %79 = arith.index_cast %78 : i32 to index
    %c0_30 = arith.constant 0 : index
    %80 = vector.load %arg10[%79, %c0_30] : memref<32x512xf32, #tpu.memory_space<vmem>>, vector<8x512xf32>
    %c0_31 = arith.constant 0 : index
    %c0_32 = arith.constant 0 : index
    %81 = vector.load %arg6[%c0_31, %c0_32] : memref<128x512xf32, #tpu.memory_space<vmem>>, vector<128x512xf32>
    %cst_33 = arith.constant dense<0.000000e+00> : vector<8x512xf32>
    %82 = tpu.matmul %76, %81, %cst_33 {dimension_numbers = #tpu.dot_dimension_numbers<[1], [0], [0], [1], [0, 0, 1, 1], [], []>} : vector<8x128xf32>, vector<128x512xf32>, vector<8x512xf32> -> vector<8x512xf32>
    %83 = arith.addf %80, %82 : vector<8x512xf32>
    %84 = vector.extract_strided_slice %83 {offsets = [0, 0], sizes = [8, 128], strides = [1, 1]} : vector<8x512xf32> to vector<8x128xf32>
    %85 = arith.negf %84 : vector<8x128xf32>
    %86 = math.exp %85 : vector<8x128xf32>
    %cst_34 = arith.constant 1.000000e+00 : f32
    %87 = vector.broadcast %cst_34 : f32 to vector<8x128xf32>
    %88 = arith.addf %87, %86 : vector<8x128xf32>
    %89 = arith.divf %87, %88 : vector<8x128xf32>
    %90 = vector.extract_strided_slice %83 {offsets = [0, 128], sizes = [8, 128], strides = [1, 1]} : vector<8x512xf32> to vector<8x128xf32>
    %91 = arith.negf %90 : vector<8x128xf32>
    %92 = math.exp %91 : vector<8x128xf32>
    %cst_35 = arith.constant 1.000000e+00 : f32
    %93 = vector.broadcast %cst_35 : f32 to vector<8x128xf32>
    %94 = arith.addf %93, %92 : vector<8x128xf32>
    %95 = arith.divf %93, %94 : vector<8x128xf32>
    %96 = vector.extract_strided_slice %83 {offsets = [0, 256], sizes = [8, 128], strides = [1, 1]} : vector<8x512xf32> to vector<8x128xf32>
    %97 = math.tanh %96 : vector<8x128xf32>
    %98 = vector.extract_strided_slice %83 {offsets = [0, 384], sizes = [8, 128], strides = [1, 1]} : vector<8x512xf32> to vector<8x128xf32>
    %99 = arith.negf %98 : vector<8x128xf32>
    %100 = math.exp %99 : vector<8x128xf32>
    %cst_36 = arith.constant 1.000000e+00 : f32
    %101 = vector.broadcast %cst_36 : f32 to vector<8x128xf32>
    %102 = arith.addf %101, %100 : vector<8x128xf32>
    %103 = arith.divf %101, %102 : vector<8x128xf32>
    %104 = arith.mulf %95, %74 : vector<8x128xf32>
    %105 = arith.mulf %89, %97 : vector<8x128xf32>
    %106 = arith.addf %104, %105 : vector<8x128xf32>
    %107 = math.tanh %106 : vector<8x128xf32>
    %108 = arith.mulf %103, %107 : vector<8x128xf32>
    %c3_i32 = arith.constant 3 : i32
    %c8_i32_37 = arith.constant 8 : i32
    %109 = arith.muli %c3_i32, %c8_i32_37 : i32
    %110 = tpu.assume_multiple %109, 8 : i32
    %111 = arith.index_cast %110 : i32 to index
    %c0_38 = arith.constant 0 : index
    %112 = vector.load %arg10[%111, %c0_38] : memref<32x512xf32, #tpu.memory_space<vmem>>, vector<8x512xf32>
    %c0_39 = arith.constant 0 : index
    %c0_40 = arith.constant 0 : index
    %113 = vector.load %arg6[%c0_39, %c0_40] : memref<128x512xf32, #tpu.memory_space<vmem>>, vector<128x512xf32>
    %cst_41 = arith.constant dense<0.000000e+00> : vector<8x512xf32>
    %114 = tpu.matmul %108, %113, %cst_41 {dimension_numbers = #tpu.dot_dimension_numbers<[1], [0], [0], [1], [0, 0, 1, 1], [], []>} : vector<8x128xf32>, vector<128x512xf32>, vector<8x512xf32> -> vector<8x512xf32>
    %115 = arith.addf %112, %114 : vector<8x512xf32>
    %116 = vector.extract_strided_slice %115 {offsets = [0, 0], sizes = [8, 128], strides = [1, 1]} : vector<8x512xf32> to vector<8x128xf32>
    %117 = arith.negf %116 : vector<8x128xf32>
    %118 = math.exp %117 : vector<8x128xf32>
    %cst_42 = arith.constant 1.000000e+00 : f32
    %119 = vector.broadcast %cst_42 : f32 to vector<8x128xf32>
    %120 = arith.addf %119, %118 : vector<8x128xf32>
    %121 = arith.divf %119, %120 : vector<8x128xf32>
    %122 = vector.extract_strided_slice %115 {offsets = [0, 128], sizes = [8, 128], strides = [1, 1]} : vector<8x512xf32> to vector<8x128xf32>
    %123 = arith.negf %122 : vector<8x128xf32>
    %124 = math.exp %123 : vector<8x128xf32>
    %cst_43 = arith.constant 1.000000e+00 : f32
    %125 = vector.broadcast %cst_43 : f32 to vector<8x128xf32>
    %126 = arith.addf %125, %124 : vector<8x128xf32>
    %127 = arith.divf %125, %126 : vector<8x128xf32>
    %128 = vector.extract_strided_slice %115 {offsets = [0, 256], sizes = [8, 128], strides = [1, 1]} : vector<8x512xf32> to vector<8x128xf32>
    %129 = math.tanh %128 : vector<8x128xf32>
    %130 = vector.extract_strided_slice %115 {offsets = [0, 384], sizes = [8, 128], strides = [1, 1]} : vector<8x512xf32> to vector<8x128xf32>
    %131 = arith.negf %130 : vector<8x128xf32>
    %132 = math.exp %131 : vector<8x128xf32>
    %cst_44 = arith.constant 1.000000e+00 : f32
    %133 = vector.broadcast %cst_44 : f32 to vector<8x128xf32>
    %134 = arith.addf %133, %132 : vector<8x128xf32>
    %135 = arith.divf %133, %134 : vector<8x128xf32>
    %136 = arith.mulf %127, %106 : vector<8x128xf32>
    %137 = arith.mulf %121, %129 : vector<8x128xf32>
    %138 = arith.addf %136, %137 : vector<8x128xf32>
    %139 = math.tanh %138 : vector<8x128xf32>
    %140 = arith.mulf %135, %139 : vector<8x128xf32>
    %c4_i32 = arith.constant 4 : i32
    %c0_45 = arith.constant 0 : index
    %c0_46 = arith.constant 0 : index
    %141 = vector.load %arg8[%c0_45, %c0_46] : memref<8x128xf32, #tpu.memory_space<vmem>>, vector<8x128xf32>
    tpu.vector_store %arg8[%c0_45, %c0_46], %140 {strides = array<i32>} : memref<8x128xf32, #tpu.memory_space<vmem>>, vector<8x128xf32>,
    %c0_47 = arith.constant 0 : index
    %c0_48 = arith.constant 0 : index
    %142 = vector.load %arg9[%c0_47, %c0_48] : memref<8x128xf32, #tpu.memory_space<vmem>>, vector<8x128xf32>
    tpu.vector_store %arg9[%c0_47, %c0_48], %138 {strides = array<i32>} : memref<8x128xf32, #tpu.memory_space<vmem>>, vector<8x128xf32>,
    return
  }
  func.func @transform_0(%arg0: i32, %arg1: i32) -> (i32, i32, i32) {
    %c0_i32 = arith.constant 0 : i32
    %c0_i32_0 = arith.constant 0 : i32
    return %arg1, %arg0, %c0_i32 : i32, i32, i32
  }
  func.func @transform_1(%arg0: i32, %arg1: i32) -> (i32, i32) {
    %c0_i32 = arith.constant 0 : i32
    %c0_i32_0 = arith.constant 0 : i32
    return %arg0, %c0_i32 : i32, i32
  }
  func.func @transform_2(%arg0: i32, %arg1: i32) -> (i32, i32) {
    %c0_i32 = arith.constant 0 : i32
    %c0_i32_0 = arith.constant 0 : i32
    return %arg0, %c0_i32 : i32, i32
  }
  func.func @transform_3(%arg0: i32, %arg1: i32) -> (i32, i32) {
    %c0_i32 = arith.constant 0 : i32
    %c0_i32_0 = arith.constant 0 : i32
    %c0_i32_1 = arith.constant 0 : i32
    return %c0_i32, %c0_i32_0 : i32, i32
  }
  func.func @transform_4(%arg0: i32, %arg1: i32) -> (i32, i32) {
    %c0_i32 = arith.constant 0 : i32
    %c0_i32_0 = arith.constant 0 : i32
    %c0_i32_1 = arith.constant 0 : i32
    return %c0_i32, %c0_i32_0 : i32, i32
  }
  func.func @transform_5(%arg0: i32, %arg1: i32) -> (i32, i32) {
    %c0_i32 = arith.constant 0 : i32
    %c0_i32_0 = arith.constant 0 : i32
    %c0_i32_1 = arith.constant 0 : i32
    return %c0_i32, %c0_i32_0 : i32, i32
  }
  func.func @transform_6(%arg0: i32, %arg1: i32) -> (i32, i32) {
    %c0_i32 = arith.constant 0 : i32
    %c0_i32_0 = arith.constant 0 : i32
    return %arg0, %c0_i32 : i32, i32
  }
  func.func @transform_7(%arg0: i32, %arg1: i32) -> (i32, i32) {
    %c0_i32 = arith.constant 0 : i32
    %c0_i32_0 = arith.constant 0 : i32
    return %arg0, %c0_i32 : i32, i32
  }
}

</mosaic_0001>

<bundles_post_ra>
// kernel: tpu_custom_call.1
= control target key start
LH: loop header
LB: loop body
LE: loop exit
PB: predicated region body
PF: predicated region fallthrough
CT: control target
= control target key end

     0   :  { %13 = vsyncpa [#allocation4], 0  ;;  %s2701_s0 = inlined_call_operand.hbm [shape: f32[8,8,128], index: 0, kind: input, shape index: {}]   ;;  %s2702_s1 = inlined_call_operand.hbm [shape: f32[8,128], index: 1, kind: input, shape index: {}]   ;;  %s2703_s2 = inlined_call_operand.hbm [shape: f32[8,128], index: 2, kind: input, shape index: {}]   ;;  %s2704_s3 = inlined_call_operand.hbm [shape: f32[128,512], index: 3, kind: input, shape index: {}]   ;;  %s2705_s4 = inlined_call_operand.hbm [shape: f32[128,512], index: 4, kind: input, shape index: {}]   ;;  %s2706_s5 = inlined_call_operand.vmem [shape: f32[1,512], index: 5, kind: input, shape index: {}]   ;;  %s2707_s6 = inlined_call_operand.hbm [shape: f32[8,128], index: 6, kind: output, shape index: {0}]   ;;  %s2708_s7 = inlined_call_operand.hbm [shape: f32[8,128], index: 7, kind: output, shape index: {1}]  }
   0x1   :  { %15 = vsyncpa [#allocation4 + $0x1], 0 }
   0x2   :  { %16 = vsyncpa [#allocation7], 0 }
   0x3   :  { %17 = vsyncpa [#allocation10], 0 }
   0x4   :  { %18 = vsyncpa [#allocation5], 0 }
   0x5   :  { %19 = vsyncpa [#allocation14], 0  ;;  %s2104_s24 = smov 0   ;;  %s2106_s25 = smov 0  }
   0x6   :  { %s2108_s26 = smov 0   ;;  %s2110_s27 = smov 0  }
   0x7   :  { %s2112_s28 = smov 0   ;;  %s2114_s29 = smov 0  }
   0x8 LB: > { %s2713_s30 = sadd.s32 4294967295, %s2050_s29   ;;  %p59_p0 = scmp.ne.s32.totalorder %s2034_s25, %s2030_s24  ;;  %s2050_s29 = sphi %s2114_s29, %s25_s29   ;;  %s2046_s28 = sphi %s2112_s28, %s2832_s28   ;;  %s2042_s27 = sphi %s2110_s27, %s2831_s27   ;;  %s2038_s26 = sphi %s2108_s26, %s2830_s26   ;;  %s2034_s25 = sphi %s2106_s25, %s2829_s25   ;;  %s2030_s24 = sphi %s2104_s24, %s2828_s24  }
   0x9   : > { %p2136_p1 = scmp.eq.s32.totalorder %s2713_s30, 0  ;;  %p1590_p2 = scmp.ge.s32.totalorder %s2050_s29, 1 }
   0xa   : > { %p237_p3 = scmp.lt.s32.totalorder %s2050_s29, 3  ;;  %s2052_s11 = smov [#allocation6]  }
   0xb   : > { %s2756_s8 = scalar_select %p2136_p1, 1, 0 }
   0xc   : > { %p2144_p4 = por %p2136_p1, %p59_p0  ;;  %p2148_p5 = pnand %p1590_p2, %p237_p3 }
   0xd   : > { %s252_s12 = sshll.u32 %s2052_s11, 4  ;;  %s2053_s13 = smov [#allocation9]   ;;  %s253_s12 = int_to_ptr.vmem [resolvable:$true] %s252_s12 }
   0xe   : > { %s2757_s9 = scalar_select %p2144_p4, 1, 0 }
   0xf   : > { %s2758_s10 = scalar_select %p2148_p5, 1, 0 }
  0x10   : > { %p1651_p6 = pneg %p2148_p5  ;;  %s275_s14 = sshll.u32 %s2053_s13, 4  ;;  %s276_s14 = int_to_ptr.vmem [resolvable:$true] %s275_s14 }
  0x11   : > { %s2054_s16 = smov [#allocation8]   ;;  %s1815_s18 = scalar_lea.vmem %s253_s12, 128 }
  0x12   : > { %p2156_p7 = pnand %p1651_p6, %p2136_p1  ;;  %s265_s17 = sshll.u32 %s2054_s16, 4  ;;  %s266_s17 = int_to_ptr.vmem [resolvable:$true] %s265_s17 }
  0x13   : > { %p1816_p9 = scmp.ne.s32.totalorder %s253_s12, %s1815_s18  ;;  %p1823_p12 = scmp.lt.s32.totalorder %s253_s12, %s253_s12 }
  0x14   : > { %p1806_p8 = pneg %p2156_p7  ;;  %p1824_p13 = scmp.lt.s32.totalorder %s1815_s18, %s1815_s18 }
  0x16   : > { %p1818_p10 = pnand %p1816_p9, %p1806_p8  ;;  %p1825_p0 = por %p1824_p13, %p1823_p12 }
  0x18   : > { %p1819_p11 = pneg %p1818_p10 }
  0x1a   : > { %p1826_p2 = pnand %p1825_p0, %p1819_p11 }
  0x1c   : > { %1829 = shalt.err (!%p1826_p2)
}
  0x1d   : > { %1654 = dma.hbm_to_vmem [thread:$0]  (!%p2156_p7), %s2702_s1, 128, %s253_s12, [#allocation7]  }
  0x1e   : > { %s1841_s21 = scalar_lea.vmem %s276_s14, 8192  ;;  %p1849_p9 = scmp.lt.s32.totalorder %s276_s14, %s276_s14 }
  0x1f   : > { %p1842_p3 = scmp.ne.s32.totalorder %s276_s14, %s1841_s21  ;;  %p1850_p10 = scmp.lt.s32.totalorder %s1841_s21, %s1841_s21 }
  0x21   : > { %p1844_p6 = pnand %p1842_p3, %p1806_p8  ;;  %p1851_p4 = por %p1850_p10, %p1849_p9 }
  0x23   : > { %p1845_p1 = pneg %p1844_p6 }
  0x25   : > { %p1852_p5 = pnand %p1851_p4, %p1845_p1 }
  0x27   : > { %1855 = shalt.err (!%p1852_p5)
}
  0x28   : > { %s2055_s22 = smov 512   ;;  %s2056_s23 = smov 32  }
  0x29   : > { %1660 = dma.hbm_to_vmem [thread:$0]  (!%p2156_p7), %s2704_s3, 8192, %s276_s14, [#allocation10], %s2055_s22, %s2055_s22, %s2056_s23  }
  0x2a   : > { %s1867_s12 = scalar_lea.vmem %s266_s17, 128  ;;  %p1875_p0 = scmp.lt.s32.totalorder %s266_s17, %s266_s17 }
  0x2b   : > { %p1868_p11 = scmp.ne.s32.totalorder %s266_s17, %s1867_s12  ;;  %p1876_p2 = scmp.lt.s32.totalorder %s1867_s12, %s1867_s12 }
  0x2d   : > { %p1870_p12 = pnand %p1868_p11, %p1806_p8  ;;  %p1877_p1 = por %p1876_p2, %p1875_p0 }
  0x2f   : > { %p1871_p13 = pneg %p1870_p12 }
  0x31   : > { %p1878_p4 = pnand %p1877_p1, %p1871_p13 }
  0x33   : > { %1881 = shalt.err (!%p1878_p4)
}
  0x34   : > { %1657 = dma.hbm_to_vmem [thread:$0]  (!%p2156_p7), %s2703_s2, 128, %s266_s17, [#allocation7]  }
  0x35   : > { %s2057_s14 = smov [#allocation11]  }
  0x36   : > { %s288_s18 = sshll.u32 %s2057_s14, 4  ;;  %s289_s18 = int_to_ptr.vmem [resolvable:$true] %s288_s18 }
  0x37   : > { %s1893_s19 = scalar_lea.vmem %s289_s18, 8192  ;;  %p1901_p9 = scmp.lt.s32.totalorder %s289_s18, %s289_s18 }
  0x38   : > { %p1894_p5 = scmp.ne.s32.totalorder %s289_s18, %s1893_s19  ;;  %p1902_p10 = scmp.lt.s32.totalorder %s1893_s19, %s1893_s19 }
  0x3a   : > { %p1896_p3 = pnand %p1894_p5, %p1806_p8  ;;  %p1903_p11 = por %p1902_p10, %p1901_p9 }
  0x3c   : > { %p1897_p6 = pneg %p1896_p3 }
  0x3e   : > { %p1904_p12 = pnand %p1903_p11, %p1897_p6 }
  0x40   : > { %1907 = shalt.err (!%p1904_p12)
}
  0x41   : > { %1663 = dma.hbm_to_vmem [thread:$0]  (!%p2156_p7), %s2705_s4, 8192, %s289_s18, [#allocation10], %s2055_s22, %s2055_s22, %s2056_s23  }
  0x42   : > { %s34_s17 = sadd.s32 1, %s2046_s28  ;;  %s46_s24 = sadd.s32 1, %s2038_s26 }
  0x43   : > { %p35_p8 = scmp.ge.s32.totalorder %s34_s17, 2  ;;  %p53_p13 = scmp.ne.s32.totalorder %s2038_s26, %s2034_s25 }
  0x44   : > { %p54_p0 = scmp.eq.s32.totalorder %s2050_s29, 0  ;;  %p1672_p2 = scmp.lt.s32.totalorder %s2050_s29, 2 }
  0x45   : > { %s2834_s17 = smov (%p35_p8, %s34_s17), 0  ;;  %s305_s15 = sand.u32 1, %s2038_s26  }
  0x46   : > { %p55_p1 = por %p54_p0, %p53_p13  ;;  %s41_s11 = ssub.s32 %s2046_s28, %s2834_s17 }
  0x47   : > { %p44_p4 = scmp.eq.s32.totalorder %s41_s11, 0  ;;  %s1596_s12 = sshll.u32 %s305_s15, 5 }
  0x48   : > { %s1624_s13 = sshll.u32 %s2046_s28, 9  ;;  %s309_s18 = scalar_lea.vmem [#allocation3], %s1596_s12 }
  0x49   : > { %s2207_s16 = scalar_select %p44_p4, %s2038_s26, %s46_s24  }
  0x4a   : > { %s316_s23 = scalar_lea.hbm %s2701_s0, %s1624_s13  ;;  %s317_s19 = sshll.u32 %s309_s18, 4  ;;  %s318_s19 = int_to_ptr.vmem [resolvable:$true] %s317_s19 }
  0x4b   : > { %p2214_p7 = pnand %p1672_p2, %p55_p1  ;;  %s306_s21 = scalar_lea.sflag [#allocation4], %s305_s15 }
  0x4c   : > { %s1921_s11 = scalar_lea.vmem %s318_s19, 512  ;;  %s2058_s24 = smov [#allocation3]  }
  0x4d   : > { %p1910_p5 = pneg %p2214_p7  ;;  %p1922_p3 = scmp.ne.s32.totalorder %s318_s19, %s1921_s11 }
  0x4e   : > { %s1926_s30 = sshll.u32 %s2058_s24, 4  ;;  %s1927_s30 = int_to_ptr.vmem [resolvable:$false] %s1926_s30 }
  0x4f   : > { %p1924_p6 = pnand %p1922_p3, %p1910_p5  ;;  %s1928_s13 = scalar_lea.vmem %s1927_s30, 1024 }
  0x50   : > { %p1929_p10 = scmp.lt.s32.totalorder %s318_s19, %s1927_s30  ;;  %p1930_p11 = scmp.lt.s32.totalorder %s1928_s13, %s1921_s11 }
  0x51   : > { %p1925_p9 = pneg %p1924_p6 }
  0x52   : > { %p1931_p12 = por %p1930_p11, %p1929_p10 }
  0x54   : > { %p1932_p8 = pnand %p1931_p12, %p1925_p9 }
  0x56   : > { %1935 = shalt.err (!%p1932_p8)
}
  0x57   : > { %s2059_s12 = smov 128   ;;  %s2060_s14 = smov 8  }
  0x58   : > { %1667 = dma.hbm_to_vmem [thread:$0]  (!%p2214_p7), %s316_s23, 512, %s318_s19, %s306_s21, %s2059_s12, %s2059_s12, %s2060_s14  }
  0x59   : > { %p2761_p13 = scmp.ne.s32.totalorder %s2758_s10, 0 }
  0x5b   : > { %329 = sbr.rel (%p2761_p13) target bundleno = 1387 (0x56b), region = 44 }
  0x60   : > { %s331_s15 = sand.u32 1, %s2034_s25   ;;  %p2762_p0 = scmp.ne.s32.totalorder %s2757_s9, 0 }
  0x61   : > { %s1600_s22 = sshll.u32 %s331_s15, 5  ;;  %s332_s18 = scalar_lea.sflag [#allocation4], %s331_s15 }
  0x62   : > { %s2225_s24 = scalar_lea.vmem [#allocation3], %s1600_s22 }
  0x63   : > { %2009 = dma.done.wait (%p2762_p0), %s332_s18, 512  }
  0x64   : > { %2011 = vsyncadd (%p2762_p0), %s332_s18, 4294966784  ;;  %p2763_p2 = scmp.ne.s32.totalorder %s2756_s8, 0 }
  0x66   : > { %2013 = dma.done.wait (%p2763_p2), [#allocation7], 256  }
  0x67   : > { %2015 = vsyncadd (%p2763_p2), [#allocation7], 4294967040 }
  0x68   : > { %2017 = dma.done.wait (%p2763_p2), [#allocation10], 16384  }
  0x69   : > { %2019 = vsyncadd (%p2763_p2), [#allocation10], 4294950912  ;;  %v2714_v0 = vmov 0.0   ;;  %v443_v1 = vld [vmem:[#allocation9 + $0x1e8] sm:$0xff]  ;;  %v445_v2 = vld [vmem:[#allocation9 + $0x1f8] sm:$0xff]  ;;  %p1605_p1 = scmp.ne.s32.totalorder %s2042_s27, 0 }
  0x6a   : > { %532 = vmatprep.mubr.f32.mxu0 %v2714_v0  ;;  %621 = vmatprep.mubr.f32.mxu1 %v2714_v0  ;;  %v442_v3 = vld [vmem:[#allocation9 + $0x1e0] sm:$0xff]  ;;  %v444_v4 = vld [vmem:[#allocation9 + $0x1f0] sm:$0xff]  ;;  %v439_v5 = vld [vmem:[#allocation9 + $0x1c8] sm:$0xff] }
  0x6b   : > { %468 = vmatprep.subr.mxu0 %v443_v1  ;;  %557 = vmatprep.subr.mxu1 %v445_v2  ;;  %v441_v6 = vld [vmem:[#allocation9 + $0x1d8] sm:$0xff]  ;;  %v438_v7 = vld [vmem:[#allocation9 + $0x1c0] sm:$0xff]  ;;  %v440_v8 = vld [vmem:[#allocation9 + $0x1d0] sm:$0xff] }
  0x6c   : > { %469 = vmatpush1.msra.mxu0 %v442_v3  ;;  %558 = vmatpush1.msra.mxu1 %v444_v4  ;;  %v435_v9 = vld [vmem:[#allocation9 + $0x1a8] sm:$0xff]  ;;  %v437_v10 = vld [vmem:[#allocation9 + $0x1b8] sm:$0xff]  ;;  %v434_v11 = vld [vmem:[#allocation9 + $0x1a0] sm:$0xff] }
  0x6d   : > { %470 = vmatprep.subr.mxu0 %v439_v5  ;;  %559 = vmatprep.subr.mxu1 %v441_v6  ;;  %v436_v12 = vld [vmem:[#allocation9 + $0x1b0] sm:$0xff]  ;;  %v431_v13 = vld [vmem:[#allocation9 + $0x188] sm:$0xff]  ;;  %v433_v14 = vld [vmem:[#allocation9 + $0x198] sm:$0xff]  ;;  %v448_v6 = vlaneseq }
  0x6e   : > { %471 = vmatpush1.msra.mxu0 %v438_v7  ;;  %560 = vmatpush1.msra.mxu1 %v440_v8  ;;  %v430_v15 = vld [vmem:[#allocation9 + $0x180] sm:$0xff]  ;;  %v432_v16 = vld [vmem:[#allocation9 + $0x190] sm:$0xff]  ;;  %v427_v17 = vld [vmem:[#allocation9 + $0x168] sm:$0xff] }
  0x6f   : > { %472 = vmatprep.subr.mxu0 %v435_v9  ;;  %561 = vmatprep.subr.mxu1 %v437_v10  ;;  %v429_v18 = vld [vmem:[#allocation9 + $0x178] sm:$0xff]  ;;  %v426_v19 = vld [vmem:[#allocation9 + $0x160] sm:$0xff]  ;;  %v428_v20 = vld [vmem:[#allocation9 + $0x170] sm:$0xff]  ;;  %v449_v7 = vshrl.u32 %v448_v6, 7 }
  0x70   : > { %473 = vmatpush1.msra.mxu0 %v434_v11  ;;  %562 = vmatpush1.msra.mxu1 %v436_v12  ;;  %v423_v21 = vld [vmem:[#allocation9 + $0x148] sm:$0xff]  ;;  %v425_v22 = vld [vmem:[#allocation9 + $0x158] sm:$0xff]  ;;  %v422_v23 = vld [vmem:[#allocation9 + $0x140] sm:$0xff] }
  0x71   : > { %474 = vmatprep.subr.mxu0 %v431_v13  ;;  %563 = vmatprep.subr.mxu1 %v433_v14  ;;  %v424_v24 = vld [vmem:[#allocation9 + $0x150] sm:$0xff]  ;;  %v419_v25 = vld [vmem:[#allocation9 + $0x128] sm:$0xff]  ;;  %v421_v26 = vld [vmem:[#allocation9 + $0x138] sm:$0xff]  ;;  %v450_v8 = vsub.s32 0, %v449_v7  ;;  %v458_v9 = vsub.s32 2, %v449_v7  ;;  %v454_v11 = vsub.s32 1, %v449_v7 }
  0x72   : > { %475 = vmatpush1.msra.mxu0 %v430_v15  ;;  %564 = vmatpush1.msra.mxu1 %v432_v16  ;;  %v418_v27 = vld [vmem:[#allocation9 + $0x120] sm:$0xff]  ;;  %v420_v28 = vld [vmem:[#allocation9 + $0x130] sm:$0xff]  ;;  %v415_v29 = vld [vmem:[#allocation9 + $0x108] sm:$0xff]  ;;  %v462_v12 = vsub.s32 3, %v449_v7 }
  0x73   : > { %476 = vmatprep.subr.mxu0 %v427_v17  ;;  %565 = vmatprep.subr.mxu1 %v429_v18  ;;  %v417_v30 = vld [vmem:[#allocation9 + $0x118] sm:$0xff]  ;;  %v414_v31 = vld [vmem:[#allocation9 + $0x100] sm:$0xff]  ;;  %v416_v32 = vld [vmem:[#allocation9 + $0x110] sm:$0xff] }
  0x74   : > { %477 = vmatpush1.msra.mxu0 %v426_v19  ;;  %566 = vmatpush1.msra.mxu1 %v428_v20  ;;  %v411_v33 = vld [vmem:[#allocation9 + $0xe8] sm:$0xff]  ;;  %v413_v34 = vld [vmem:[#allocation9 + $0xf8] sm:$0xff]  ;;  %v410_v35 = vld [vmem:[#allocation9 + $0xe0] sm:$0xff] }
  0x75   : > { %478 = vmatprep.subr.mxu0 %v423_v21  ;;  %567 = vmatprep.subr.mxu1 %v425_v22  ;;  %v412_v36 = vld [vmem:[#allocation9 + $0xf0] sm:$0xff]  ;;  %v407_v37 = vld [vmem:[#allocation9 + $0xc8] sm:$0xff]  ;;  %v409_v38 = vld [vmem:[#allocation9 + $0xd8] sm:$0xff] }
  0x76   : > { %479 = vmatpush1.msra.mxu0 %v422_v23  ;;  %568 = vmatpush1.msra.mxu1 %v424_v24  ;;  %v406_v39 = vld [vmem:[#allocation9 + $0xc0] sm:$0xff]  ;;  %v408_v40 = vld [vmem:[#allocation9 + $0xd0] sm:$0xff]  ;;  %v403_v41 = vld [vmem:[#allocation9 + $0xa8] sm:$0xff] }
  0x77   : > { %480 = vmatprep.subr.mxu0 %v419_v25  ;;  %569 = vmatprep.subr.mxu1 %v421_v26  ;;  %v405_v42 = vld [vmem:[#allocation9 + $0xb8] sm:$0xff]  ;;  %v402_v43 = vld [vmem:[#allocation9 + $0xa0] sm:$0xff]  ;;  %v404_v44 = vld [vmem:[#allocation9 + $0xb0] sm:$0xff] }
  0x78   : > { %481 = vmatpush1.msra.mxu0 %v418_v27  ;;  %570 = vmatpush1.msra.mxu1 %v420_v28  ;;  %v399_v45 = vld [vmem:[#allocation9 + $0x88] sm:$0xff]  ;;  %v401_v46 = vld [vmem:[#allocation9 + $0x98] sm:$0xff]  ;;  %v398_v47 = vld [vmem:[#allocation9 + $0x80] sm:$0xff] }
  0x79   : > { %482 = vmatprep.subr.mxu0 %v415_v29  ;;  %571 = vmatprep.subr.mxu1 %v417_v30  ;;  %v400_v48 = vld [vmem:[#allocation9 + $0x90] sm:$0xff]  ;;  %v395_v49 = vld [vmem:[#allocation9 + $0x68] sm:$0xff]  ;;  %v397_v50 = vld [vmem:[#allocation9 + $0x78] sm:$0xff] }
  0x7a   : > { %483 = vmatpush1.msra.mxu0 %v414_v31  ;;  %572 = vmatpush1.msra.mxu1 %v416_v32  ;;  %v394_v51 = vld [vmem:[#allocation9 + $0x60] sm:$0xff]  ;;  %v396_v52 = vld [vmem:[#allocation9 + $0x70] sm:$0xff]  ;;  %v391_v53 = vld [vmem:[#allocation9 + $0x48] sm:$0xff] }
  0x7b   : > { %484 = vmatprep.subr.mxu0 %v411_v33  ;;  %573 = vmatprep.subr.mxu1 %v413_v34  ;;  %v393_v54 = vld [vmem:[#allocation9 + $0x58] sm:$0xff]  ;;  %v390_v55 = vld [vmem:[#allocation9 + $0x40] sm:$0xff]  ;;  %v392_v56 = vld [vmem:[#allocation9 + $0x50] sm:$0xff] }
  0x7c   : > { %485 = vmatpush1.msra.mxu0 %v410_v35  ;;  %574 = vmatpush1.msra.mxu1 %v412_v36  ;;  %v387_v57 = vld [vmem:[#allocation9 + $0x28] sm:$0xff]  ;;  %v389_v58 = vld [vmem:[#allocation9 + $0x38] sm:$0xff]  ;;  %v386_v59 = vld [vmem:[#allocation9 + $0x20] sm:$0xff] }
  0x7d   : > { %486 = vmatprep.subr.mxu0 %v407_v37  ;;  %575 = vmatprep.subr.mxu1 %v409_v38  ;;  %v388_v60 = vld [vmem:[#allocation9 + $0x30] sm:$0xff]  ;;  %v383_v61 = vld [vmem:[#allocation9 + $0x8] sm:$0xff]  ;;  %v385_v62 = vld [vmem:[#allocation9 + $0x18] sm:$0xff] }
  0x7e   : > { %487 = vmatpush1.msra.mxu0 %v406_v39  ;;  %576 = vmatpush1.msra.mxu1 %v408_v40  ;;  %v382_v63 = vld [vmem:[#allocation9] sm:$0xff]  ;;  %v384_v1 = vld [vmem:[#allocation9 + $0x10] sm:$0xff]  ;;  %v379_v3 = vld [vmem:[%s2225_s24 + $0x8] sm:$0xff] }
  0x7f   : > { %488 = vmatprep.subr.mxu0 %v403_v41  ;;  %577 = vmatprep.subr.mxu1 %v405_v42  ;;  %v378_v2 = vld [vmem:[%s2225_s24] sm:$0xff]  ;;  %v380_v4 = vld [vmem:[%s2225_s24 + $0x10] sm:$0xff]  ;;  %v381_v5 = vld [vmem:[%s2225_s24 + $0x18] sm:$0xff] }
  0x80   : > { %489 = vmatpush1.msra.mxu0 %v402_v43  ;;  %578 = vmatpush1.msra.mxu1 %v404_v44  ;;  %v446_v10 = vld [vmem:[%s2706_s5] sm:$0xf] }
  0x81   : > { %490 = vmatprep.subr.mxu0 %v399_v45  ;;  %579 = vmatprep.subr.mxu1 %v401_v46  ;;  %v451_v13 = vrot.slane %v446_v10, %v450_v8  ;;  %v459_v14 = vrot.slane %v446_v10, %v458_v9  ;;  %v455_v15 = vrot.slane %v446_v10, %v454_v11 }
  0x82   : > { %491 = vmatpush1.msra.mxu0 %v398_v47  ;;  %580 = vmatpush1.msra.mxu1 %v400_v48  ;;  %v463_v16 = vrot.slane %v446_v10, %v462_v12 }
  0x83   : > { %492 = vmatprep.subr.mxu0 %v395_v49  ;;  %581 = vmatprep.subr.mxu1 %v397_v50 }
  0x84   : > { %493 = vmatpush1.msra.mxu0 %v394_v51  ;;  %582 = vmatpush1.msra.mxu1 %v396_v52 }
  0x85   : > { %494 = vmatprep.subr.mxu0 %v391_v53  ;;  %583 = vmatprep.subr.mxu1 %v393_v54 }
  0x86   : > { %495 = vmatpush1.msra.mxu0 %v390_v55  ;;  %584 = vmatpush1.msra.mxu1 %v392_v56 }
  0x87   : > { %496 = vmatprep.subr.mxu0 %v387_v57  ;;  %585 = vmatprep.subr.mxu1 %v389_v58 }
  0x88   : > { %497 = vmatpush1.msra.mxu0 %v386_v59  ;;  %586 = vmatpush1.msra.mxu1 %v388_v60 }
  0x89   : > { %498 = vmatprep.subr.mxu0 %v383_v61  ;;  %587 = vmatprep.subr.mxu1 %v385_v62 }
  0x8a   : > { %499 = vmatpush1.msra.mxu0 %v382_v63  ;;  %588 = vmatpush1.msra.mxu1 %v384_v1 }
  0x8b   : > { %533 = vmatmul.mubr.f32.vlgmr.msra.gmra.mxu0 %v378_v2  ;;  %622 = vmatmul.mubr.f32.vlgmr.msra.gmra.mxu1 %v378_v2 }
  0x8c   : > { %538 = vmatprep.mubr.f32.mxu0 %v2714_v0  ;;  %627 = vmatprep.mubr.f32.mxu1 %v2714_v0 }
  0x8f   : > { %539 = vmatmul.mubr.f32.gmra.mxu0 %v379_v3  ;;  %628 = vmatmul.mubr.f32.gmra.mxu1 %v379_v3 }
  0x90   : > { %544 = vmatprep.mubr.f32.mxu0 %v2714_v0  ;;  %633 = vmatprep.mubr.f32.mxu1 %v2714_v0 }
  0x93   : > { %545 = vmatmul.mubr.f32.gmra.mxu0 %v380_v4  ;;  %634 = vmatmul.mubr.f32.gmra.mxu1 %v380_v4 }
  0x94   : > { %550 = vmatprep.mubr.f32.mxu0 %v2714_v0  ;;  %639 = vmatprep.mubr.f32.mxu1 %v2714_v0 }
  0x97   : > { %551 = vmatmul.mubr.f32.gmra.mxu0 %v381_v5  ;;  %640 = vmatmul.mubr.f32.gmra.mxu1 %v381_v5 }
 0x14b   : > { %v534_v17 = vpop.f32.mrf.mxu0  ;;  %v623_v18 = vpop.f32.mrf.mxu1 }
 0x14c   : > { %v535_v19 = vadd.f32 %v534_v17, %v451_v13  ;;  %v624_v20 = vadd.f32 %v623_v18, %v459_v14 }
 0x14d   : > { %v536_v21 = vpop.f32.mrf.mxu0  ;;  %v625_v22 = vpop.f32.mrf.mxu1 }
 0x14e   : > { %646 = vst [vmem:[#allocation2 + $0x30] sm:$0xff] %v535_v19  ;;  %648 = vst [vmem:[#allocation2 + $0x58] sm:$0xff] %v624_v20  ;;  %v537_v23 = vadd.f32 %v536_v21, %v455_v15  ;;  %v626_v24 = vadd.f32 %v625_v22, %v463_v16 }
 0x14f   : > { %v540_v25 = vpop.f32.mrf.mxu0  ;;  %v629_v26 = vpop.f32.mrf.mxu1 }
 0x150   : > { %647 = vst [vmem:[#allocation2] sm:$0xff] %v537_v23  ;;  %649 = vst [vmem:[#allocation2 + $0x18] sm:$0xff] %v626_v24  ;;  %v541_v27 = vadd.f32 %v540_v25, %v451_v13  ;;  %v630_v28 = vadd.f32 %v629_v26, %v459_v14 }
 0x151   : > { %v542_v29 = vpop.f32.mrf.mxu0  ;;  %v631_v30 = vpop.f32.mrf.mxu1 }
 0x152   : > { %650 = vst [vmem:[#allocation2 + $0x50] sm:$0xff] %v541_v27  ;;  %652 = vst [vmem:[#allocation2 + $0x8] sm:$0xff] %v630_v28  ;;  %v543_v31 = vadd.f32 %v542_v29, %v455_v15  ;;  %v632_v32 = vadd.f32 %v631_v30, %v463_v16 }
 0x153   : > { %v546_v33 = vpop.f32.mrf.mxu0  ;;  %v635_v34 = vpop.f32.mrf.mxu1 }
 0x154   : > { %651 = vst [vmem:[#allocation2 + $0x68] sm:$0xff] %v543_v31  ;;  %653 = vst [vmem:[#allocation2 + $0x48] sm:$0xff] %v632_v32  ;;  %v547_v35 = vadd.f32 %v546_v33, %v451_v13  ;;  %v636_v36 = vadd.f32 %v635_v34, %v459_v14 }
 0x155   : > { %v548_v37 = vpop.f32.mrf.mxu0  ;;  %v637_v38 = vpop.f32.mrf.mxu1 }
 0x156   : > { %654 = vst [vmem:[#allocation2 + $0x40] sm:$0xff] %v547_v35  ;;  %656 = vst [vmem:[#allocation2 + $0x10] sm:$0xff] %v636_v36  ;;  %v549_v39 = vadd.f32 %v548_v37, %v455_v15  ;;  %v638_v40 = vadd.f32 %v637_v38, %v463_v16 }
 0x157   : > { %v552_v41 = vpop.f32.mrf.mxu0  ;;  %v641_v42 = vpop.f32.mrf.mxu1 }
 0x158   : > { %655 = vst [vmem:[#allocation2 + $0x20] sm:$0xff] %v549_v39  ;;  %657 = vst [vmem:[#allocation2 + $0x38] sm:$0xff] %v638_v40  ;;  %v553_v43 = vadd.f32 %v552_v41, %v451_v13  ;;  %v642_v44 = vadd.f32 %v641_v42, %v459_v14  ;;  %665 = sbr.rel (%p1605_p1) target bundleno = 351 (0x15f), region = 68 }
 0x159   : > { %v554_v45 = vpop.f32.mrf.mxu0  ;;  %v643_v46 = vpop.f32.mrf.mxu1 }
 0x15a   : > { %658 = vst [vmem:[#allocation2 + $0x60] sm:$0xff] %v553_v43  ;;  %660 = vst [vmem:[#allocation2 + $0x78] sm:$0xff] %v642_v44  ;;  %v555_v47 = vadd.f32 %v554_v45, %v455_v15  ;;  %v644_v48 = vadd.f32 %v643_v46, %v463_v16 }
 0x15c   : > { %659 = vst [vmem:[#allocation2 + $0x70] sm:$0xff] %v555_v47  ;;  %661 = vst [vmem:[#allocation2 + $0x28] sm:$0xff] %v644_v48 }
 0x15d   : > { %v666_v49 = vld [vmem:[#allocation6] sm:$0xff]  ;;  %v668_v50 = vld [vmem:[#allocation8] sm:$0xff] }
 0x15e   : > { %667 = vst [vmem:[#allocation12] sm:$0xff] %v666_v49  ;;  %669 = vst [vmem:[#allocation13] sm:$0xff] %v668_v50 }
 0x15f PF: > { %v2255_v51 = vld [vmem:[#allocation11 + $0x1e8] sm:$0xff]  ;;  %v2257_v52 = vld [vmem:[#allocation11 + $0x1e0] sm:$0xff]  ;;  %807 = vmatprep.mubr.f32.mxu0 %v2714_v0  ;;  %878 = vmatprep.mubr.f32.mxu1 %v2714_v0  ;;  %v2278_v59 = vld [vmem:[#allocation11 + $0x1f8] sm:$0xff]  ;;  %s2062_s27 = smov [#allocation13]   ;;  %s2826_s10 = sadd.s32 4294967295, %s2050_s29  }
 0x160   : > { %2764 = vst [vmem:[#allocation20_spill] sm:$0xff] %v2255_v51  ;;  %v2259_v53 = vld [vmem:[#allocation11 + $0x1c8] sm:$0xff]  ;;  %743 = vmatprep.subr.mxu0 %v2255_v51  ;;  %v2264_v54 = vld [vmem:[#allocation11 + $0x1c0] sm:$0xff]  ;;  %2765 = vst [vmem:[#allocation21_spill] sm:$0xff] %v2278_v59  ;;  %814 = vmatprep.subr.mxu1 %v2278_v59  ;;  %s1468_s9 = sshll.u32 %s2062_s27, 4  ;;  %p2657_p4 = scmp.eq.s32.totalorder %s2826_s10, 1  ;;  %s1469_s9 = int_to_ptr.vmem [resolvable:$true] %s1468_s9 }
 0x161   : > { %744 = vmatpush1.msra.mxu0 %v2257_v52  ;;  %v2267_v55 = vld [vmem:[#allocation11 + $0x1a8] sm:$0xff]  ;;  %v2270_v56 = vld [vmem:[#allocation11 + $0x1a0] sm:$0xff]  ;;  %v2284_v61 = vld [vmem:[#allocation11 + $0x1f0] sm:$0xff]  ;;  %s1936_s19 = scalar_lea.vmem %s1469_s9, 128  ;;  %p1943_p6 = scmp.lt.s32.totalorder %s1469_s9, %s1469_s9 }
 0x162   : > { %745 = vmatprep.subr.mxu0 %v2259_v53  ;;  %v2273_v57 = vld [vmem:[#allocation11 + $0x188] sm:$0xff]  ;;  %v2276_v58 = vld [vmem:[#allocation11 + $0x180] sm:$0xff]  ;;  %815 = vmatpush1.msra.mxu1 %v2284_v61  ;;  %v2290_v63 = vld [vmem:[#allocation11 + $0x1d8] sm:$0xff]  ;;  %p1937_p7 = scmp.ne.s32.totalorder %s1469_s9, %s1936_s19  ;;  %p1944_p9 = scmp.lt.s32.totalorder %s1936_s19, %s1936_s19 }
 0x163   : > { %746 = vmatpush1.msra.mxu0 %v2264_v54  ;;  %v2281_v60 = vld [vmem:[#allocation11 + $0x168] sm:$0xff]  ;;  %v2287_v62 = vld [vmem:[#allocation11 + $0x160] sm:$0xff]  ;;  %v2292_v1 = vld [vmem:[#allocation11 + $0x1d0] sm:$0xff]  ;;  %816 = vmatprep.subr.mxu1 %v2290_v63 }
 0x164   : > { %747 = vmatprep.subr.mxu0 %v2267_v55  ;;  %v2295_v2 = vld [vmem:[#allocation11 + $0x148] sm:$0xff]  ;;  %v2298_v3 = vld [vmem:[#allocation11 + $0x1b8] sm:$0xff]  ;;  %v2301_v4 = vld [vmem:[#allocation11 + $0x140] sm:$0xff]  ;;  %817 = vmatpush1.msra.mxu1 %v2292_v1  ;;  %p1938_p5 = pnand %p1937_p7, %p2657_p4  ;;  %p1945_p10 = por %p1944_p9, %p1943_p6 }
 0x165   : > { %748 = vmatpush1.msra.mxu0 %v2270_v56  ;;  %v2304_v5 = vld [vmem:[#allocation11 + $0x1b0] sm:$0xff]  ;;  %v2306_v6 = vld [vmem:[#allocation11 + $0x198] sm:$0xff]  ;;  %v2309_v7 = vld [vmem:[#allocation11 + $0x128] sm:$0xff]  ;;  %818 = vmatprep.subr.mxu1 %v2298_v3 }
 0x166   : > { %749 = vmatprep.subr.mxu0 %v2273_v57  ;;  %v2312_v8 = vld [vmem:[#allocation11 + $0x190] sm:$0xff]  ;;  %v2315_v9 = vld [vmem:[#allocation11 + $0x120] sm:$0xff]  ;;  %819 = vmatpush1.msra.mxu1 %v2304_v5  ;;  %v2318_v10 = vld [vmem:[#allocation11 + $0x178] sm:$0xff]  ;;  %p1939_p3 = pneg %p1938_p5 }
 0x167   : > { %750 = vmatpush1.msra.mxu0 %v2276_v58  ;;  %v2321_v11 = vld [vmem:[#allocation11 + $0x108] sm:$0xff]  ;;  %820 = vmatprep.subr.mxu1 %v2306_v6  ;;  %v2324_v12 = vld [vmem:[#allocation11 + $0x170] sm:$0xff]  ;;  %v2327_v13 = vld [vmem:[#allocation11 + $0x100] sm:$0xff] }
 0x168   : > { %751 = vmatprep.subr.mxu0 %v2281_v60  ;;  %821 = vmatpush1.msra.mxu1 %v2312_v8  ;;  %v2330_v14 = vld [vmem:[#allocation11 + $0x158] sm:$0xff]  ;;  %v2333_v15 = vld [vmem:[#allocation11 + $0xe8] sm:$0xff]  ;;  %v2336_v16 = vld [vmem:[#allocation11 + $0x150] sm:$0xff]  ;;  %p1946_p11 = pnand %p1945_p10, %p1939_p3 }
 0x169   : > { %752 = vmatpush1.msra.mxu0 %v2287_v62  ;;  %822 = vmatprep.subr.mxu1 %v2318_v10  ;;  %v2339_v17 = vld [vmem:[#allocation11 + $0xe0] sm:$0xff]  ;;  %v2342_v18 = vld [vmem:[#allocation11 + $0x138] sm:$0xff]  ;;  %v2345_v19 = vld [vmem:[#allocation11 + $0xc8] sm:$0xff] }
 0x16a   : > { %753 = vmatprep.subr.mxu0 %v2295_v2  ;;  %823 = vmatpush1.msra.mxu1 %v2324_v12  ;;  %v2348_v20 = vld [vmem:[#allocation11 + $0x130] sm:$0xff]  ;;  %v2351_v21 = vld [vmem:[#allocation11 + $0xc0] sm:$0xff]  ;;  %v2354_v22 = vld [vmem:[#allocation11 + $0x118] sm:$0xff] }
 0x16b   : > { %754 = vmatpush1.msra.mxu0 %v2301_v4  ;;  %824 = vmatprep.subr.mxu1 %v2330_v14  ;;  %v2357_v23 = vld [vmem:[#allocation11 + $0xa8] sm:$0xff]  ;;  %v2360_v24 = vld [vmem:[#allocation11 + $0x110] sm:$0xff]  ;;  %v2363_v25 = vld [vmem:[#allocation11 + $0xa0] sm:$0xff] }
 0x16c   : > { %755 = vmatprep.subr.mxu0 %v2309_v7  ;;  %825 = vmatpush1.msra.mxu1 %v2336_v16  ;;  %v2366_v26 = vld [vmem:[#allocation11 + $0xf8] sm:$0xff]  ;;  %v2369_v27 = vld [vmem:[#allocation11 + $0x88] sm:$0xff]  ;;  %v2372_v28 = vld [vmem:[#allocation11 + $0xf0] sm:$0xff] }
 0x16d   : > { %756 = vmatpush1.msra.mxu0 %v2315_v9  ;;  %826 = vmatprep.subr.mxu1 %v2342_v18  ;;  %v2375_v29 = vld [vmem:[#allocation11 + $0x80] sm:$0xff]  ;;  %v2378_v30 = vld [vmem:[#allocation11 + $0xd8] sm:$0xff]  ;;  %v2381_v31 = vld [vmem:[#allocation11 + $0x68] sm:$0xff] }
 0x16e   : > { %757 = vmatprep.subr.mxu0 %v2321_v11  ;;  %827 = vmatpush1.msra.mxu1 %v2348_v20  ;;  %2766 = vst [vmem:[#allocation22_spill] sm:$0xff] %v2375_v29  ;;  %2767 = vst [vmem:[#allocation23_spill] sm:$0xff] %v2381_v31  ;;  %v2384_v32 = vld [vmem:[#allocation11 + $0xd0] sm:$0xff]  ;;  %v2387_v33 = vld [vmem:[#allocation11 + $0x60] sm:$0xff] }
 0x16f   : > { %758 = vmatpush1.msra.mxu0 %v2327_v13  ;;  %828 = vmatprep.subr.mxu1 %v2354_v22  ;;  %2768 = vst [vmem:[#allocation24_spill] sm:$0xff] %v2387_v33  ;;  %v2390_v34 = vld [vmem:[#allocation11 + $0xb8] sm:$0xff]  ;;  %v2393_v35 = vld [vmem:[#allocation11 + $0x48] sm:$0xff]  ;;  %v2396_v36 = vld [vmem:[#allocation11 + $0xb0] sm:$0xff] }
 0x170   : > { %759 = vmatprep.subr.mxu0 %v2333_v15  ;;  %829 = vmatpush1.msra.mxu1 %v2360_v24  ;;  %2769 = vst [vmem:[#allocation25_spill] sm:$0xff] %v2393_v35  ;;  %v2399_v37 = vld [vmem:[#allocation11 + $0x40] sm:$0xff]  ;;  %v2402_v38 = vld [vmem:[#allocation11 + $0x98] sm:$0xff]  ;;  %v2405_v39 = vld [vmem:[#allocation11 + $0x28] sm:$0xff] }
 0x171   : > { %760 = vmatpush1.msra.mxu0 %v2339_v17  ;;  %830 = vmatprep.subr.mxu1 %v2366_v26  ;;  %2770 = vst [vmem:[#allocation26_spill] sm:$0xff] %v2399_v37  ;;  %2771 = vst [vmem:[#allocation27_spill] sm:$0xff] %v2405_v39  ;;  %v2408_v40 = vld [vmem:[#allocation11 + $0x90] sm:$0xff]  ;;  %v2411_v41 = vld [vmem:[#allocation11 + $0x20] sm:$0xff] }
 0x172   : > { %761 = vmatprep.subr.mxu0 %v2345_v19  ;;  %831 = vmatpush1.msra.mxu1 %v2372_v28  ;;  %2772 = vst [vmem:[#allocation28_spill] sm:$0xff] %v2408_v40  ;;  %2773 = vst [vmem:[#allocation29_spill] sm:$0xff] %v2411_v41  ;;  %v2414_v42 = vld [vmem:[#allocation11 + $0x78] sm:$0xff]  ;;  %v2417_v43 = vld [vmem:[#allocation11 + $0x8] sm:$0xff] }
 0x173   : > { %762 = vmatpush1.msra.mxu0 %v2351_v21  ;;  %832 = vmatprep.subr.mxu1 %v2378_v30  ;;  %2774 = vst [vmem:[#allocation30_spill] sm:$0xff] %v2414_v42  ;;  %2775 = vst [vmem:[#allocation31_spill] sm:$0xff] %v2417_v43  ;;  %v2420_v44 = vld [vmem:[#allocation11 + $0x70] sm:$0xff]  ;;  %v2423_v45 = vld [vmem:[#allocation11] sm:$0xff] }
 0x174   : > { %763 = vmatprep.subr.mxu0 %v2357_v23  ;;  %833 = vmatpush1.msra.mxu1 %v2384_v32  ;;  %2776 = vst [vmem:[#allocation32_spill] sm:$0xff] %v2420_v44  ;;  %2777 = vst [vmem:[#allocation33_spill] sm:$0xff] %v2423_v45  ;;  %v2426_v46 = vld [vmem:[#allocation11 + $0x58] sm:$0xff]  ;;  %v670_v47 = vld [vmem:[#allocation12] sm:$0xff] }
 0x175   : > { %764 = vmatpush1.msra.mxu0 %v2363_v25  ;;  %834 = vmatprep.subr.mxu1 %v2390_v34  ;;  %2778 = vst [vmem:[#allocation34_spill] sm:$0xff] %v2426_v46  ;;  %v2430_v48 = vld [vmem:[#allocation11 + $0x50] sm:$0xff]  ;;  %v2434_v49 = vld [vmem:[#allocation11 + $0x38] sm:$0xff] }
 0x176   : > { %765 = vmatprep.subr.mxu0 %v2369_v27  ;;  %835 = vmatpush1.msra.mxu1 %v2396_v36  ;;  %2779 = vst [vmem:[#allocation35_spill] sm:$0xff] %v2430_v48  ;;  %2780 = vst [vmem:[#allocation36_spill] sm:$0xff] %v2434_v49  ;;  %v2438_v50 = vld [vmem:[#allocation11 + $0x30] sm:$0xff]  ;;  %v2441_v0 = vld [vmem:[#allocation11 + $0x18] sm:$0xff] }
 0x177   : > { %766 = vmatpush1.msra.mxu0 %v2375_v29  ;;  %836 = vmatprep.subr.mxu1 %v2402_v38  ;;  %2781 = vst [vmem:[#allocation37_spill] sm:$0xff] %v2438_v50  ;;  %2782 = vst [vmem:[#allocation38_spill] sm:$0xff] %v2441_v0 }
 0x178   : > { %767 = vmatprep.subr.mxu0 %v2381_v31  ;;  %837 = vmatpush1.msra.mxu1 %v2408_v40 }
 0x179   : > { %768 = vmatpush1.msra.mxu0 %v2387_v33  ;;  %838 = vmatprep.subr.mxu1 %v2414_v42 }
 0x17a   : > { %769 = vmatprep.subr.mxu0 %v2393_v35  ;;  %839 = vmatpush1.msra.mxu1 %v2420_v44 }
 0x17b   : > { %770 = vmatpush1.msra.mxu0 %v2399_v37  ;;  %840 = vmatprep.subr.mxu1 %v2426_v46 }
 0x17c   : > { %771 = vmatprep.subr.mxu0 %v2405_v39  ;;  %841 = vmatpush1.msra.mxu1 %v2430_v48 }
 0x17d   : > { %772 = vmatpush1.msra.mxu0 %v2411_v41  ;;  %842 = vmatprep.subr.mxu1 %v2434_v49  ;;  %v2444_v41 = vld [vmem:[#allocation11 + $0x10] sm:$0xff] }
 0x17e   : > { %773 = vmatprep.subr.mxu0 %v2417_v43  ;;  %2783 = vst [vmem:[#allocation39_spill] sm:$0xff] %v2444_v41  ;;  %843 = vmatpush1.msra.mxu1 %v2438_v50 }
 0x17f   : > { %774 = vmatpush1.msra.mxu0 %v2423_v45  ;;  %844 = vmatprep.subr.mxu1 %v2441_v0 }
 0x180   : > { %808 = vmatmul.mubr.f32.vlgmr.msra.gmra.mxu0 %v670_v47  ;;  %920 = vmatprep.subr.mxu0 %v2255_v51 }
 0x181   : > { %921 = vmatpush1.msra.mxu0 %v2257_v52  ;;  %845 = vmatpush1.msra.mxu1 %v2444_v41 }
 0x182   : > { %922 = vmatprep.subr.mxu0 %v2259_v53  ;;  %879 = vmatmul.mubr.f32.vlgmr.msra.gmra.mxu1 %v670_v47  ;;  %v2784_v47 = vld [vmem:[#allocation29_spill] sm:$0xff] }
 0x183   : > { %923 = vmatpush1.msra.mxu0 %v2264_v54  ;;  %991 = vmatprep.subr.mxu1 %v2278_v59 }
 0x184   : > { %992 = vmatpush1.msra.mxu1 %v2284_v61  ;;  %924 = vmatprep.subr.mxu0 %v2267_v55 }
 0x185   : > { %993 = vmatprep.subr.mxu1 %v2290_v63  ;;  %925 = vmatpush1.msra.mxu0 %v2270_v56 }
 0x186   : > { %994 = vmatpush1.msra.mxu1 %v2292_v1  ;;  %926 = vmatprep.subr.mxu0 %v2273_v57 }
 0x187   : > { %995 = vmatprep.subr.mxu1 %v2298_v3  ;;  %927 = vmatpush1.msra.mxu0 %v2276_v58 }
 0x188   : > { %996 = vmatpush1.msra.mxu1 %v2304_v5  ;;  %928 = vmatprep.subr.mxu0 %v2281_v60 }
 0x189   : > { %997 = vmatprep.subr.mxu1 %v2306_v6  ;;  %929 = vmatpush1.msra.mxu0 %v2287_v62 }
 0x18a   : > { %998 = vmatpush1.msra.mxu1 %v2312_v8  ;;  %930 = vmatprep.subr.mxu0 %v2295_v2 }
 0x18b   : > { %999 = vmatprep.subr.mxu1 %v2318_v10  ;;  %931 = vmatpush1.msra.mxu0 %v2301_v4 }
 0x18c   : > { %1000 = vmatpush1.msra.mxu1 %v2324_v12  ;;  %932 = vmatprep.subr.mxu0 %v2309_v7 }
 0x18d   : > { %1001 = vmatprep.subr.mxu1 %v2330_v14  ;;  %933 = vmatpush1.msra.mxu0 %v2315_v9 }
 0x18e   : > { %1002 = vmatpush1.msra.mxu1 %v2336_v16  ;;  %934 = vmatprep.subr.mxu0 %v2321_v11 }
 0x18f   : > { %1003 = vmatprep.subr.mxu1 %v2342_v18  ;;  %935 = vmatpush1.msra.mxu0 %v2327_v13 }
 0x190   : > { %1004 = vmatpush1.msra.mxu1 %v2348_v20  ;;  %936 = vmatprep.subr.mxu0 %v2333_v15 }
 0x191   : > { %1005 = vmatprep.subr.mxu1 %v2354_v22  ;;  %937 = vmatpush1.msra.mxu0 %v2339_v17 }
 0x192   : > { %1006 = vmatpush1.msra.mxu1 %v2360_v24  ;;  %938 = vmatprep.subr.mxu0 %v2345_v19 }
 0x193   : > { %1007 = vmatprep.subr.mxu1 %v2366_v26  ;;  %939 = vmatpush1.msra.mxu0 %v2351_v21 }
 0x194   : > { %1008 = vmatpush1.msra.mxu1 %v2372_v28  ;;  %940 = vmatprep.subr.mxu0 %v2357_v23 }
 0x195   : > { %1009 = vmatprep.subr.mxu1 %v2378_v30  ;;  %941 = vmatpush1.msra.mxu0 %v2363_v25 }
 0x196   : > { %1010 = vmatpush1.msra.mxu1 %v2384_v32  ;;  %942 = vmatprep.subr.mxu0 %v2369_v27 }
 0x197   : > { %1011 = vmatprep.subr.mxu1 %v2390_v34  ;;  %943 = vmatpush1.msra.mxu0 %v2375_v29 }
 0x198   : > { %1012 = vmatpush1.msra.mxu1 %v2396_v36  ;;  %944 = vmatprep.subr.mxu0 %v2381_v31 }
 0x199   : > { %1013 = vmatprep.subr.mxu1 %v2402_v38  ;;  %945 = vmatpush1.msra.mxu0 %v2387_v33 }
 0x19a   : > { %1014 = vmatpush1.msra.mxu1 %v2408_v40  ;;  %946 = vmatprep.subr.mxu0 %v2393_v35  ;;  %v2785_v35 = vmov 0.0  }
 0x19b   : > { %1015 = vmatprep.subr.mxu1 %v2414_v42  ;;  %947 = vmatpush1.msra.mxu0 %v2399_v37 }
 0x19c   : > { %1016 = vmatpush1.msra.mxu1 %v2420_v44  ;;  %948 = vmatprep.subr.mxu0 %v2405_v39  ;;  %v676_v39 = vld [vmem:[#allocation2] sm:$0xff] }
 0x19d   : > { %1017 = vmatprep.subr.mxu1 %v2426_v46  ;;  %949 = vmatpush1.msra.mxu0 %v2784_v47  ;;  %v675_v47 = vld [vmem:[#allocation2 + $0x30] sm:$0xff] }
 0x19e   : > { %1018 = vmatpush1.msra.mxu1 %v2430_v48  ;;  %950 = vmatprep.subr.mxu0 %v2417_v43 }
 0x19f   : > { %1019 = vmatprep.subr.mxu1 %v2434_v49  ;;  %951 = vmatpush1.msra.mxu0 %v2423_v45 }
 0x1a0   : > { %1020 = vmatpush1.msra.mxu1 %v2438_v50  ;;  %984 = vmatprep.mubr.f32.mxu0 %v2785_v35 }
 0x1a1   : > { %1021 = vmatprep.subr.mxu1 %v2441_v0  ;;  %1055 = vmatprep.mubr.f32.mxu1 %v2785_v35  ;;  %v678_v0 = vld [vmem:[#allocation2 + $0x18] sm:$0xff] }
 0x1a2   : > { %1022 = vmatpush1.msra.mxu1 %v2444_v41  ;;  %1097 = vmatprep.subr.mxu0 %v2255_v51  ;;  %v677_v35 = vld [vmem:[#allocation2 + $0x58] sm:$0xff] }
 0x1a3   : > { %1168 = vmatprep.subr.mxu1 %v2278_v59 }
 0x240   : > { %v809_v43 = vpop.f32.mrf.mxu0 }
 0x241   : > { %v885_v49 = vadd.f32 %v809_v43, %v675_v47 }
 0x242   : > { %v811_v48 = vpop.f32.mrf.mxu0  ;;  %v880_v46 = vpop.f32.mrf.mxu1 }
 0x243   : > { %v1606_v45 = vmul.f32 -1.442695, %v885_v49  ;;  %v886_v37 = vadd.f32 %v811_v48, %v676_v39  ;;  %v887_v41 = vadd.f32 %v880_v46, %v677_v35  ;;  %v2788_v35 = vld [vmem:[#allocation23_spill] sm:$0xff]  ;;  %v2793_v46 = vld [vmem:[#allocation34_spill] sm:$0xff] }
 0x244   : > { %v882_v44 = vpop.f32.mrf.mxu1 }
 0x245   : > { %1740 = vpow2.f32 %v1606_v45  ;;  %v1607_v50 = vmul.f32 -1.442695, %v886_v37  ;;  %v888_v33 = vadd.f32 %v882_v44, %v678_v0  ;;  %v671_v37 = vld [vmem:[#allocation13] sm:$0xff]  ;;  %v2792_v44 = vld [vmem:[#allocation25_spill] sm:$0xff] }
 0x247   : > { %1742 = vpow2.f32 %v1607_v50  ;;  %v1608_v42 = vmul.f32 -1.442695, %v888_v33 }
 0x248   : > { %1744 = vtanh.f32 %v887_v41  ;;  %v2790_v41 = vld [vmem:[#allocation24_spill] sm:$0xff] }
 0x249   : > { %1746 = vpow2.f32 %v1608_v42  ;;  %v2791_v42 = vld [vmem:[#allocation32_spill] sm:$0xff] }
 0x252   : > { %v1741_v51 = vpop.eup %1740 }
 0x253   : > { %v892_v31 = vadd.f32 1.0, %v1741_v51 }
 0x254   : > { %v1743_v59 = vpop.eup %1742 }
 0x255   : > { %1748 = vrcp.f32 %v892_v31  ;;  %v898_v43 = vadd.f32 1.0, %v1743_v59  ;;  %v1745_v49 = vpop.eup %1744  ;;  %v2786_v59 = vld [vmem:[#allocation22_spill] sm:$0xff]  ;;  %v2787_v31 = vld [vmem:[#allocation28_spill] sm:$0xff] }
 0x256   : > { %v1747_v39 = vpop.eup %1746 }
 0x257   : > { %1750 = vrcp.f32 %v898_v43  ;;  %v905_v50 = vadd.f32 1.0, %v1747_v39  ;;  %v2794_v43 = vld [vmem:[#allocation26_spill] sm:$0xff]  ;;  %v2796_v39 = vld [vmem:[#allocation27_spill] sm:$0xff] }
 0x259   : > { %1752 = vrcp.f32 %v905_v50  ;;  %v2800_v50 = vld [vmem:[#allocation31_spill] sm:$0xff] }
 0x262   : > { %v1749_v45 = vpop.eup %1748 }
 0x263   : > { %v909_v40 = vmul.f32 %v1749_v45, %v1745_v49  ;;  %v2795_v49 = vld [vmem:[#allocation35_spill] sm:$0xff]  ;;  %v2797_v45 = vld [vmem:[#allocation36_spill] sm:$0xff] }
 0x264   : > { %v1751_v48 = vpop.eup %1750 }
 0x265   : > { %v908_v47 = vmul.f32 %v1751_v48, %v671_v37  ;;  %v2798_v37 = vld [vmem:[#allocation29_spill] sm:$0xff] }
 0x266   : > { %v1753_v0 = vpop.eup %1752  ;;  %v2799_v48 = vld [vmem:[#allocation37_spill] sm:$0xff] }
 0x267   : > { %v2517_v29 = vadd.f32 %v909_v40, %v908_v47  ;;  %v2789_v40 = vld [vmem:[#allocation30_spill] sm:$0xff] }
 0x268   : > { %v2801_v47 = vld [vmem:[#allocation38_spill] sm:$0xff] }
 0x269   : > { %1754 = vtanh.f32 %v2517_v29 }
 0x276   : > { %v1755_v51 = vpop.eup %1754 }
 0x277   : > { %v912_v33 = vmul.f32 %v1755_v51, %v1753_v0  ;;  %v2802_v0 = vld [vmem:[#allocation33_spill] sm:$0xff]  ;;  %v2803_v51 = vmov 0.0  }
 0x279   : > { %985 = vmatmul.mubr.f32.vlgmr.msra.gmra.mxu0 %v912_v33  ;;  %1056 = vmatmul.mubr.f32.vlgmr.msra.gmra.mxu1 %v912_v33  ;;  %v2804_v33 = vld [vmem:[#allocation39_spill] sm:$0xff] }
 0x27a   : > { %1098 = vmatpush1.msra.mxu0 %v2257_v52  ;;  %1169 = vmatpush1.msra.mxu1 %v2284_v61 }
 0x27b   : > { %1099 = vmatprep.subr.mxu0 %v2259_v53  ;;  %1170 = vmatprep.subr.mxu1 %v2290_v63 }
 0x27c   : > { %1100 = vmatpush1.msra.mxu0 %v2264_v54  ;;  %1171 = vmatpush1.msra.mxu1 %v2292_v1 }
 0x27d   : > { %1101 = vmatprep.subr.mxu0 %v2267_v55  ;;  %1172 = vmatprep.subr.mxu1 %v2298_v3 }
 0x27e   : > { %1102 = vmatpush1.msra.mxu0 %v2270_v56  ;;  %1173 = vmatpush1.msra.mxu1 %v2304_v5 }
 0x27f   : > { %1103 = vmatprep.subr.mxu0 %v2273_v57  ;;  %1174 = vmatprep.subr.mxu1 %v2306_v6 }
 0x280   : > { %1104 = vmatpush1.msra.mxu0 %v2276_v58  ;;  %1175 = vmatpush1.msra.mxu1 %v2312_v8 }
 0x281   : > { %1105 = vmatprep.subr.mxu0 %v2281_v60  ;;  %1176 = vmatprep.subr.mxu1 %v2318_v10 }
 0x282   : > { %1106 = vmatpush1.msra.mxu0 %v2287_v62  ;;  %1177 = vmatpush1.msra.mxu1 %v2324_v12 }
 0x283   : > { %1107 = vmatprep.subr.mxu0 %v2295_v2  ;;  %1178 = vmatprep.subr.mxu1 %v2330_v14 }
 0x284   : > { %1108 = vmatpush1.msra.mxu0 %v2301_v4  ;;  %1179 = vmatpush1.msra.mxu1 %v2336_v16 }
 0x285   : > { %1109 = vmatprep.subr.mxu0 %v2309_v7  ;;  %1180 = vmatprep.subr.mxu1 %v2342_v18 }
 0x286   : > { %1110 = vmatpush1.msra.mxu0 %v2315_v9  ;;  %1181 = vmatpush1.msra.mxu1 %v2348_v20 }
 0x287   : > { %1111 = vmatprep.subr.mxu0 %v2321_v11  ;;  %1182 = vmatprep.subr.mxu1 %v2354_v22 }
 0x288   : > { %1112 = vmatpush1.msra.mxu0 %v2327_v13  ;;  %1183 = vmatpush1.msra.mxu1 %v2360_v24 }
 0x289   : > { %1113 = vmatprep.subr.mxu0 %v2333_v15  ;;  %1184 = vmatprep.subr.mxu1 %v2366_v26 }
 0x28a   : > { %1114 = vmatpush1.msra.mxu0 %v2339_v17  ;;  %1185 = vmatpush1.msra.mxu1 %v2372_v28 }
 0x28b   : > { %1115 = vmatprep.subr.mxu0 %v2345_v19  ;;  %1186 = vmatprep.subr.mxu1 %v2378_v30 }
 0x28c   : > { %1116 = vmatpush1.msra.mxu0 %v2351_v21  ;;  %1187 = vmatpush1.msra.mxu1 %v2384_v32 }
 0x28d   : > { %1117 = vmatprep.subr.mxu0 %v2357_v23  ;;  %1188 = vmatprep.subr.mxu1 %v2390_v34 }
 0x28e   : > { %1118 = vmatpush1.msra.mxu0 %v2363_v25  ;;  %1189 = vmatpush1.msra.mxu1 %v2396_v36 }
 0x28f   : > { %1119 = vmatprep.subr.mxu0 %v2369_v27  ;;  %1190 = vmatprep.subr.mxu1 %v2402_v38 }
 0x290   : > { %1120 = vmatpush1.msra.mxu0 %v2786_v59  ;;  %1191 = vmatpush1.msra.mxu1 %v2787_v31 }
 0x291   : > { %1121 = vmatprep.subr.mxu0 %v2788_v35  ;;  %1192 = vmatprep.subr.mxu1 %v2789_v40  ;;  %v918_v40 = vld [vmem:[#allocation2 + $0x8] sm:$0xff] }
 0x292   : > { %1122 = vmatpush1.msra.mxu0 %v2790_v41  ;;  %1193 = vmatpush1.msra.mxu1 %v2791_v42  ;;  %v919_v42 = vld [vmem:[#allocation2 + $0x48] sm:$0xff] }
 0x293   : > { %1123 = vmatprep.subr.mxu0 %v2792_v44  ;;  %1194 = vmatprep.subr.mxu1 %v2793_v46 }
 0x294   : > { %1124 = vmatpush1.msra.mxu0 %v2794_v43  ;;  %1195 = vmatpush1.msra.mxu1 %v2795_v49  ;;  %v2805_v49 = vld [vmem:[#allocation20_spill] sm:$0xff]  ;;  %v917_v43 = vld [vmem:[#allocation2 + $0x68] sm:$0xff] }
 0x295   : > { %1125 = vmatprep.subr.mxu0 %v2796_v39  ;;  %1196 = vmatprep.subr.mxu1 %v2797_v45  ;;  %v2806_v39 = vld [vmem:[#allocation21_spill] sm:$0xff]  ;;  %v916_v45 = vld [vmem:[#allocation2 + $0x50] sm:$0xff] }
 0x296   : > { %1126 = vmatpush1.msra.mxu0 %v2798_v37  ;;  %1197 = vmatpush1.msra.mxu1 %v2799_v48 }
 0x297   : > { %1127 = vmatprep.subr.mxu0 %v2800_v50  ;;  %1198 = vmatprep.subr.mxu1 %v2801_v47 }
 0x298   : > { %1128 = vmatpush1.msra.mxu0 %v2802_v0  ;;  %1161 = vmatprep.mubr.f32.mxu0 %v2803_v51 }
 0x299   : > { %1199 = vmatpush1.msra.mxu1 %v2804_v33  ;;  %1232 = vmatprep.mubr.f32.mxu1 %v2803_v51 }
 0x29a   : > { %1274 = vmatprep.subr.mxu0 %v2805_v49  ;;  %1345 = vmatprep.subr.mxu1 %v2806_v39 }
 0x339   : > { %v986_v37 = vpop.f32.mrf.mxu0  ;;  %v1057_v47 = vpop.f32.mrf.mxu1 }
 0x33a   : > { %v1062_v48 = vadd.f32 %v986_v37, %v916_v45  ;;  %v1064_v49 = vadd.f32 %v1057_v47, %v918_v40 }
 0x33b   : > { %v988_v46 = vpop.f32.mrf.mxu0  ;;  %v1059_v41 = vpop.f32.mrf.mxu1 }
 0x33c   : > { %v1609_v50 = vmul.f32 -1.442695, %v1062_v48  ;;  %v1063_v44 = vadd.f32 %v988_v46, %v917_v43  ;;  %v1065_v33 = vadd.f32 %v1059_v41, %v919_v42 }
 0x33e   : > { %1756 = vpow2.f32 %v1609_v50  ;;  %v1610_v0 = vmul.f32 -1.442695, %v1063_v44  ;;  %v1611_v51 = vmul.f32 -1.442695, %v1065_v33 }
 0x340   : > { %1758 = vpow2.f32 %v1610_v0 }
 0x341   : > { %1760 = vpow2.f32 %v1611_v51  ;;  %v1270_v51 = vld [vmem:[#allocation2 + $0x60] sm:$0xff] }
 0x34b   : > { %v1757_v35 = vpop.eup %1756 }
 0x34c   : > { %v1069_v31 = vadd.f32 1.0, %v1757_v35 }
 0x34d   : > { %v1759_v39 = vpop.eup %1758 }
 0x34e   : > { %1762 = vrcp.f32 %v1069_v31  ;;  %v1075_v59 = vadd.f32 1.0, %v1759_v39  ;;  %v1761_v45 = vpop.eup %1760 }
 0x34f   : > { %1764 = vtanh.f32 %v1064_v49  ;;  %v1082_v44 = vadd.f32 1.0, %v1761_v45  ;;  %v1271_v49 = vld [vmem:[#allocation2 + $0x70] sm:$0xff] }
 0x350   : > { %1766 = vrcp.f32 %v1075_v59 }
 0x351   : > { %1768 = vrcp.f32 %v1082_v44 }
 0x35b   : > { %v1763_v46 = vpop.eup %1762 }
 0x35c   : > { %v1765_v43 = vpop.eup %1764 }
 0x35d   : > { %v1767_v37 = vpop.eup %1766  ;;  %v1086_v48 = vmul.f32 %v1765_v43, %v1763_v46 }
 0x35e   : > { %v1085_v50 = vmul.f32 %v1767_v37, %v2517_v29  ;;  %v1769_v35 = vpop.eup %1768 }
 0x360   : > { %v2587_v41 = vadd.f32 %v1086_v48, %v1085_v50  ;;  %v1273_v48 = vld [vmem:[#allocation2 + $0x28] sm:$0xff] }
 0x362   : > { %1770 = vtanh.f32 %v2587_v41 }
 0x36f   : > { %v1771_v40 = vpop.eup %1770 }
 0x370   : > { %v1089_v42 = vmul.f32 %v1771_v40, %v1769_v35  ;;  %v1272_v35 = vld [vmem:[#allocation2 + $0x78] sm:$0xff] }
 0x372   : > { %1162 = vmatmul.mubr.f32.vlgmr.msra.gmra.mxu0 %v1089_v42  ;;  %1233 = vmatmul.mubr.f32.vlgmr.msra.gmra.mxu1 %v1089_v42 }
 0x373   : > { %1275 = vmatpush1.msra.mxu0 %v2257_v52  ;;  %1346 = vmatpush1.msra.mxu1 %v2284_v61  ;;  %v2807_v52 = vld [vmem:[#allocation22_spill] sm:$0xff] }
 0x374   : > { %1276 = vmatprep.subr.mxu0 %v2259_v53  ;;  %1347 = vmatprep.subr.mxu1 %v2290_v63  ;;  %v2808_v53 = vld [vmem:[#allocation28_spill] sm:$0xff]  ;;  %v2815_v61 = vld [vmem:[#allocation26_spill] sm:$0xff]  ;;  %v2817_v63 = vld [vmem:[#allocation27_spill] sm:$0xff] }
 0x375   : > { %1277 = vmatpush1.msra.mxu0 %v2264_v54  ;;  %1348 = vmatpush1.msra.mxu1 %v2292_v1  ;;  %v2809_v54 = vld [vmem:[#allocation23_spill] sm:$0xff]  ;;  %v2818_v1 = vld [vmem:[#allocation36_spill] sm:$0xff] }
 0x376   : > { %1278 = vmatprep.subr.mxu0 %v2267_v55  ;;  %1349 = vmatprep.subr.mxu1 %v2298_v3  ;;  %v2810_v55 = vld [vmem:[#allocation30_spill] sm:$0xff]  ;;  %v2820_v3 = vld [vmem:[#allocation37_spill] sm:$0xff] }
 0x377   : > { %1279 = vmatpush1.msra.mxu0 %v2270_v56  ;;  %1350 = vmatpush1.msra.mxu1 %v2304_v5  ;;  %v2811_v56 = vld [vmem:[#allocation24_spill] sm:$0xff]  ;;  %v2822_v5 = vld [vmem:[#allocation38_spill] sm:$0xff] }
 0x378   : > { %1280 = vmatprep.subr.mxu0 %v2273_v57  ;;  %1351 = vmatprep.subr.mxu1 %v2306_v6  ;;  %v2812_v57 = vld [vmem:[#allocation32_spill] sm:$0xff]  ;;  %v2823_v6 = vld [vmem:[#allocation33_spill] sm:$0xff] }
 0x379   : > { %1281 = vmatpush1.msra.mxu0 %v2276_v58  ;;  %1352 = vmatpush1.msra.mxu1 %v2312_v8  ;;  %v2813_v58 = vld [vmem:[#allocation25_spill] sm:$0xff]  ;;  %v2825_v8 = vld [vmem:[#allocation39_spill] sm:$0xff] }
 0x37a   : > { %1282 = vmatprep.subr.mxu0 %v2281_v60  ;;  %1353 = vmatprep.subr.mxu1 %v2318_v10  ;;  %v2814_v60 = vld [vmem:[#allocation34_spill] sm:$0xff] }
 0x37b   : > { %1283 = vmatpush1.msra.mxu0 %v2287_v62  ;;  %1354 = vmatpush1.msra.mxu1 %v2324_v12  ;;  %v2816_v62 = vld [vmem:[#allocation35_spill] sm:$0xff] }
 0x37c   : > { %1284 = vmatprep.subr.mxu0 %v2295_v2  ;;  %1355 = vmatprep.subr.mxu1 %v2330_v14  ;;  %v2819_v2 = vld [vmem:[#allocation29_spill] sm:$0xff] }
 0x37d   : > { %1285 = vmatpush1.msra.mxu0 %v2301_v4  ;;  %1356 = vmatpush1.msra.mxu1 %v2336_v16  ;;  %v2821_v4 = vld [vmem:[#allocation31_spill] sm:$0xff] }
 0x37e   : > { %1286 = vmatprep.subr.mxu0 %v2309_v7  ;;  %1357 = vmatprep.subr.mxu1 %v2342_v18  ;;  %v2824_v7 = vmov 0.0   ;;  %v1096_v18 = vld [vmem:[#allocation2 + $0x38] sm:$0xff] }
 0x37f   : > { %1287 = vmatpush1.msra.mxu0 %v2315_v9  ;;  %1358 = vmatpush1.msra.mxu1 %v2348_v20  ;;  %v1093_v9 = vld [vmem:[#allocation2 + $0x40] sm:$0xff] }
 0x380   : > { %1288 = vmatprep.subr.mxu0 %v2321_v11  ;;  %1359 = vmatprep.subr.mxu1 %v2354_v22  ;;  %v1094_v11 = vld [vmem:[#allocation2 + $0x20] sm:$0xff] }
 0x381   : > { %1289 = vmatpush1.msra.mxu0 %v2327_v13  ;;  %1360 = vmatpush1.msra.mxu1 %v2360_v24 }
 0x382   : > { %1290 = vmatprep.subr.mxu0 %v2333_v15  ;;  %1361 = vmatprep.subr.mxu1 %v2366_v26 }
 0x383   : > { %1291 = vmatpush1.msra.mxu0 %v2339_v17  ;;  %1362 = vmatpush1.msra.mxu1 %v2372_v28 }
 0x384   : > { %1292 = vmatprep.subr.mxu0 %v2345_v19  ;;  %1363 = vmatprep.subr.mxu1 %v2378_v30 }
 0x385   : > { %1293 = vmatpush1.msra.mxu0 %v2351_v21  ;;  %1364 = vmatpush1.msra.mxu1 %v2384_v32  ;;  %v1095_v21 = vld [vmem:[#allocation2 + $0x10] sm:$0xff] }
 0x386   : > { %1294 = vmatprep.subr.mxu0 %v2357_v23  ;;  %1365 = vmatprep.subr.mxu1 %v2390_v34 }
 0x387   : > { %1295 = vmatpush1.msra.mxu0 %v2363_v25  ;;  %1366 = vmatpush1.msra.mxu1 %v2396_v36 }
 0x388   : > { %1296 = vmatprep.subr.mxu0 %v2369_v27  ;;  %1367 = vmatprep.subr.mxu1 %v2402_v38 }
 0x389   : > { %1297 = vmatpush1.msra.mxu0 %v2807_v52  ;;  %1368 = vmatpush1.msra.mxu1 %v2808_v53 }
 0x38a   : > { %1298 = vmatprep.subr.mxu0 %v2809_v54  ;;  %1369 = vmatprep.subr.mxu1 %v2810_v55 }
 0x38b   : > { %1299 = vmatpush1.msra.mxu0 %v2811_v56  ;;  %1370 = vmatpush1.msra.mxu1 %v2812_v57 }
 0x38c   : > { %1300 = vmatprep.subr.mxu0 %v2813_v58  ;;  %1371 = vmatprep.subr.mxu1 %v2814_v60 }
 0x38d   : > { %1301 = vmatpush1.msra.mxu0 %v2815_v61  ;;  %1372 = vmatpush1.msra.mxu1 %v2816_v62 }
 0x38e   : > { %1302 = vmatprep.subr.mxu0 %v2817_v63  ;;  %1373 = vmatprep.subr.mxu1 %v2818_v1 }
 0x38f   : > { %1303 = vmatpush1.msra.mxu0 %v2819_v2  ;;  %1374 = vmatpush1.msra.mxu1 %v2820_v3 }
 0x390   : > { %1304 = vmatprep.subr.mxu0 %v2821_v4  ;;  %1375 = vmatprep.subr.mxu1 %v2822_v5 }
 0x391   : > { %1305 = vmatpush1.msra.mxu0 %v2823_v6  ;;  %1338 = vmatprep.mubr.f32.mxu0 %v2824_v7 }
 0x392   : > { %1376 = vmatpush1.msra.mxu1 %v2825_v8  ;;  %1409 = vmatprep.mubr.f32.mxu1 %v2824_v7 }
 0x432   : > { %v1163_v10 = vpop.f32.mrf.mxu0  ;;  %v1234_v16 = vpop.f32.mrf.mxu1 }
 0x433   : > { %v1239_v12 = vadd.f32 %v1163_v10, %v1093_v9  ;;  %v1241_v24 = vadd.f32 %v1234_v16, %v1095_v21 }
 0x434   : > { %v1165_v13 = vpop.f32.mrf.mxu0  ;;  %v1236_v19 = vpop.f32.mrf.mxu1 }
 0x435   : > { %v1612_v14 = vmul.f32 -1.442695, %v1239_v12  ;;  %v1240_v15 = vadd.f32 %v1165_v13, %v1094_v11  ;;  %v1242_v20 = vadd.f32 %v1236_v19, %v1096_v18 }
 0x437   : > { %1772 = vpow2.f32 %v1612_v14  ;;  %v1613_v17 = vmul.f32 -1.442695, %v1240_v15  ;;  %v1614_v22 = vmul.f32 -1.442695, %v1242_v20 }
 0x439   : > { %1774 = vpow2.f32 %v1613_v17 }
 0x43a   : > { %1776 = vpow2.f32 %v1614_v22 }
 0x444   : > { %v1773_v23 = vpop.eup %1772 }
 0x445   : > { %v1246_v25 = vadd.f32 1.0, %v1773_v23 }
 0x446   : > { %v1775_v26 = vpop.eup %1774 }
 0x447   : > { %1778 = vrcp.f32 %v1246_v25  ;;  %v1252_v27 = vadd.f32 1.0, %v1775_v26  ;;  %v1777_v28 = vpop.eup %1776 }
 0x448   : > { %1780 = vtanh.f32 %v1241_v24  ;;  %v1259_v34 = vadd.f32 1.0, %v1777_v28 }
 0x449   : > { %1782 = vrcp.f32 %v1252_v27 }
 0x44a   : > { %1784 = vrcp.f32 %v1259_v34 }
 0x454   : > { %v1779_v29 = vpop.eup %1778 }
 0x455   : > { %v1781_v30 = vpop.eup %1780 }
 0x456   : > { %v1783_v32 = vpop.eup %1782  ;;  %v1263_v36 = vmul.f32 %v1781_v30, %v1779_v29 }
 0x457   : > { %v1262_v38 = vmul.f32 %v1783_v32, %v2587_v41  ;;  %v1785_v31 = vpop.eup %1784 }
 0x459   : > { %v1264_v59 = vadd.f32 %v1263_v36, %v1262_v38 }
 0x45b   : > { %1786 = vtanh.f32 %v1264_v59 }
 0x468   : > { %v1787_v47 = vpop.eup %1786 }
 0x469   : > { %v1266_v0 = vmul.f32 %v1787_v47, %v1785_v31 }
 0x46b   : > { %1339 = vmatmul.mubr.f32.vlgmr.msra.gmra.mxu0 %v1266_v0  ;;  %1410 = vmatmul.mubr.f32.vlgmr.msra.gmra.mxu1 %v1266_v0 }
 0x52b   : > { %v1340_v33 = vpop.f32.mrf.mxu0  ;;  %v1411_v37 = vpop.f32.mrf.mxu1 }
 0x52c   : > { %v1416_v39 = vadd.f32 %v1340_v33, %v1270_v51  ;;  %v1418_v52 = vadd.f32 %v1411_v37, %v1272_v35 }
 0x52d   : > { %v1342_v45 = vpop.f32.mrf.mxu0  ;;  %v1413_v50 = vpop.f32.mrf.mxu1 }
 0x52e   : > { %v1615_v46 = vmul.f32 -1.442695, %v1416_v39  ;;  %v1417_v43 = vadd.f32 %v1342_v45, %v1271_v49  ;;  %v1419_v41 = vadd.f32 %v1413_v50, %v1273_v48 }
 0x530   : > { %1788 = vpow2.f32 %v1615_v46  ;;  %v1616_v44 = vmul.f32 -1.442695, %v1417_v43  ;;  %v1617_v40 = vmul.f32 -1.442695, %v1419_v41 }
 0x532   : > { %1790 = vpow2.f32 %v1616_v44 }
 0x533   : > { %1792 = vpow2.f32 %v1617_v40 }
 0x53d   : > { %v1789_v42 = vpop.eup %1788 }
 0x53e   : > { %v1423_v53 = vadd.f32 1.0, %v1789_v42 }
 0x53f   : > { %v1791_v54 = vpop.eup %1790 }
 0x540   : > { %1794 = vrcp.f32 %v1423_v53  ;;  %v1429_v55 = vadd.f32 1.0, %v1791_v54  ;;  %v1793_v56 = vpop.eup %1792 }
 0x541   : > { %1796 = vtanh.f32 %v1418_v52  ;;  %v1436_v61 = vadd.f32 1.0, %v1793_v56 }
 0x542   : > { %1798 = vrcp.f32 %v1429_v55 }
 0x543   : > { %1800 = vrcp.f32 %v1436_v61 }
 0x54d   : > { %v1795_v57 = vpop.eup %1794 }
 0x54e   : > { %v1797_v58 = vpop.eup %1796 }
 0x54f   : > { %v1799_v60 = vpop.eup %1798  ;;  %v1440_v62 = vmul.f32 %v1797_v58, %v1795_v57 }
 0x550   : > { %v1439_v63 = vmul.f32 %v1799_v60, %v1264_v59 }
 0x552   : > { %v1441_v1 = vadd.f32 %v1440_v62, %v1439_v63 }
 0x554   : > { %1802 = vtanh.f32 %v1441_v1  ;;  %1445 = vst [vmem:[#allocation13] sm:$0xff] %v1441_v1 }
 0x555   : > { %1949 = shalt.err (!%p1946_p11)
}
 0x556   : > { %1646 = dma.vmem_to_hbm [thread:$0]  (%p2657_p4), %s1469_s9, 128, %s2708_s7, [#allocation14]   ;;  %v1801_v2 = vpop.eup %1800 }
 0x557   : > { %s2063_s11 = smov [#allocation12]  }
 0x558   : > { %s1455_s13 = sshll.u32 %s2063_s11, 4  ;;  %s1456_s13 = int_to_ptr.vmem [resolvable:$true] %s1455_s13 }
 0x559   : > { %s1960_s12 = scalar_lea.vmem %s1456_s13, 128  ;;  %p1967_p0 = scmp.lt.s32.totalorder %s1456_s13, %s1456_s13 }
 0x55a   : > { %p1961_p12 = scmp.ne.s32.totalorder %s1456_s13, %s1960_s12  ;;  %p1968_p2 = scmp.lt.s32.totalorder %s1960_s12, %s1960_s12 }
 0x55c   : > { %p1962_p8 = pnand %p1961_p12, %p2657_p4  ;;  %p1969_p1 = por %p1968_p2, %p1967_p0 }
 0x55e   : > { %p1963_p13 = pneg %p1962_p8 }
 0x560   : > { %p1970_p7 = pnand %p1969_p1, %p1963_p13 }
 0x561   : > { %v1803_v3 = vpop.eup %1802 }
 0x562   : > { %v1443_v4 = vmul.f32 %v1803_v3, %v1801_v2 }
 0x564   : > { %1444 = vst [vmem:[#allocation12] sm:$0xff] %v1443_v4 }
 0x565   : > { %1973 = shalt.err (!%p1970_p7)
}
 0x566   : > { %1644 = dma.vmem_to_hbm [thread:$0]  (%p2657_p4), %s1456_s13, 128, %s2707_s6, [#allocation5]  }
 0x567   : > { %2021 = dma.done.wait (%p2657_p4), [#allocation5], 128  }
 0x568   : > { %2023 = vsyncadd (%p2657_p4), [#allocation5], 4294967168 }
 0x569   : > { %2025 = dma.done.wait (%p2657_p4), [#allocation14], 128  }
 0x56a   : > { %2027 = vsyncadd (%p2657_p4), [#allocation14], 4294967168 }
 0x56b PF: > { %s25_s29 = sadd.s32 1, %s2050_s29   ;;  %s2828_s24 = smov %s2034_s25 }
 0x56c   : > { %p22_p5 = scmp.ge.s32.totalorder %s25_s29, 4   ;;  %s2829_s25 = smov %s2038_s26 }
 0x56d   : > { %s2830_s26 = smov %s2207_s16  ;;  %s2831_s27 = smov %s2046_s28 }
 0x56e   : > { %s2832_s28 = smov %s2834_s17  ;;  %24 = sbr.rel (!%p22_p5) target bundleno = 8 (0x8), region = 117 }
 0x573   :  { %1485 = vsyncpa [#allocation4], 1 }
 0x574   :  { %1487 = vsyncpa [#allocation4 + $0x1], 1 }
 0x575   :  { %1488 = vsyncpa [#allocation7], 1 }
 0x576   :  { %1489 = vsyncpa [#allocation10], 1 }
 0x577   :  { %1490 = vsyncpa [#allocation5], 1 }
 0x578   :  { %1492 = vsyncpa [#allocation5 + $0x1], 1 }
 0x579   :  { %1493 = vsyncpa [#allocation14], 1 }

</bundles_post_ra>
